<compile_context>
chip_gen: v5e
topology: v5e:2x2
jax: 0.10.0
libtpu: 0.0.40
codegen_flags: <defaults>
</compile_context>

<pallas_src>
import functools

import jax
import jax.numpy as jnp
import numpy as np
from jax import lax
from jax.experimental import pallas as pl
from jax.experimental.pallas import tpu as pltpu


# ---------------------------------------------------------------------------
# Fused bottleneck kernel: conv1+bn1+relu -> conv2(3x3)+bn2+relu ->
# conv3+bn3 + residual + relu, all in VMEM.
# ---------------------------------------------------------------------------
def bottleneck_kernel(x_ref, w1_ref, b1_ref, w2_ref, b2_ref, w3_ref, b3_ref,
                      o_ref, pad_ref, *, H, W):
    width = w1_ref.shape[1]

    x2d = x_ref[0]                                   # (H*W, Cin) f32 (residual)
    xb = x2d.astype(jnp.bfloat16)                    # bf16 feed to the MXU

    # ---- conv1 (1x1, BN scale folded into weights) + bias + ReLU ----------
    h1 = jnp.dot(xb, w1_ref[...], preferred_element_type=jnp.float32)
    h1 = jnp.maximum(h1 + b1_ref[...], 0.0)          # (H*W, width) f32

    # ---- conv2 (3x3, pad=1, stride=1) as 9 accumulated matmuls ------------
    # Zero-padded VMEM scratch holds the conv1 output with a 1-pixel halo.
    pad_ref[...] = jnp.zeros_like(pad_ref)
    pad_ref[1:H + 1, 1:W + 1, :] = h1.reshape(H, W, width)

    acc = jnp.zeros((H * W, width), jnp.float32)
    for t in range(9):                               # unrolled tap loop
        dy, dx = t // 3, t % 3
        patch = pad_ref[dy:dy + H, dx:dx + W, :].reshape(H * W, width)
        acc += jnp.dot(patch.astype(jnp.bfloat16), w2_ref[t],
                       preferred_element_type=jnp.float32)
    h2 = jnp.maximum(acc + b2_ref[...], 0.0)         # (H*W, width) f32

    # ---- conv3 (1x1) + bias + residual + ReLU ------------------------------
    h3 = jnp.dot(h2.astype(jnp.bfloat16), w3_ref[...],
                 preferred_element_type=jnp.float32)
    y = jnp.maximum(h3 + b3_ref[...] + x2d, 0.0)     # (H*W, cout) f32
    o_ref[0] = y.astype(o_ref.dtype)


# ---------------------------------------------------------------------------
# Glue: BN folding, parameter construction, wrapper
# ---------------------------------------------------------------------------
def fold_bn(gamma, beta, mean, var, eps=1e-5):
    scale = gamma / jnp.sqrt(var + eps)              # (C,)
    bias = (beta - mean * scale).reshape(1, -1)      # (1, C) f32
    return scale, bias


def make_bottleneck_params(key, inplanes, planes, base_width=64):
    width = int(planes * (base_width / 64.0))
    cout = planes * 4
    ks = jax.random.split(key, 8)

    def conv(k, shape):                              # OIHW like PyTorch
        return jax.random.normal(k, shape, jnp.float32) * 0.1

    def bn(k, c):
        k1, k2, k3, k4 = jax.random.split(k, 4)
        gamma = jax.random.uniform(k1, (c,), jnp.float32, 0.5, 1.5)
        beta = jax.random.normal(k2, (c,), jnp.float32) * 0.1
        mean = jax.random.normal(k3, (c,), jnp.float32) * 0.1
        var = jax.random.uniform(k4, (c,), jnp.float32, 0.5, 1.5)
        return gamma, beta, mean, var

    params = {
        "w1": conv(ks[0], (width, inplanes, 1, 1)),
        "bn1": bn(ks[1], width),
        "w2": conv(ks[2], (width, width, 3, 3)),
        "bn2": bn(ks[3], width),
        "w3": conv(ks[4], (cout, width, 1, 1)),
        "bn3": bn(ks[5], cout),
    }
    return params, width, cout


def bottleneck_forward(x_nchw, params, stride=1, eps=1e-5):
    """Fused Bottleneck forward (downsample=None, inference-mode BatchNorm)."""
    # TODO(synk): downsample / stride!=1 shortcut path not implemented
    # (module default is downsample=None, stride=1).
    assert stride == 1, "only the identity-shortcut (stride=1) path is supported"
    N, Cin, H, W = x_nchw.shape
    w1, w2, w3 = params["w1"], params["w2"], params["w3"]
    width = w1.shape[0]
    cout = w3.shape[0]
    assert Cin == cout, "identity shortcut requires inplanes == 4*planes"
    assert W % 8 == 0, "W must be a multiple of 8 for the in-kernel reshapes"
    # TODO(synk): for very large H*W a row-tiled variant with a 1-row halo is
    # needed to keep the per-step VMEM footprint bounded (fine at these sizes).

    # NCHW -> channel-last rows (N, H*W, Cin); the reshape is free in XLA.
    x = jnp.transpose(x_nchw, (0, 2, 3, 1)).reshape(N, H * W, Cin)

    s1, b1 = fold_bn(*params["bn1"], eps)
    s2, b2 = fold_bn(*params["bn2"], eps)
    s3, b3 = fold_bn(*params["bn3"], eps)

    # Fold BN scale into the weight columns; cast weights once to bf16.
    w1m = (w1.reshape(width, Cin).T * s1).astype(jnp.bfloat16)          # (Cin, width)
    w2m = (jnp.transpose(w2, (2, 3, 1, 0)).reshape(9, width, width)
           * s2.reshape(1, 1, width)).astype(jnp.bfloat16)              # (9, width, width)
    w3m = (w3.reshape(cout, width).T * s3).astype(jnp.bfloat16)         # (width, cout)

    kernel = functools.partial(bottleneck_kernel, H=H, W=W)
    out = pl.pallas_call(
        kernel,
        out_shape=jax.ShapeDtypeStruct((N, H * W, cout), jnp.float32),
        grid=(N,),
        in_specs=[
            pl.BlockSpec((1, H * W, Cin), lambda n: (n, 0, 0)),         # x
            pl.BlockSpec((Cin, width), lambda n: (0, 0)),               # w1
            pl.BlockSpec((1, width), lambda n: (0, 0)),                 # b1
            pl.BlockSpec((9, width, width), lambda n: (0, 0, 0)),       # w2 taps
            pl.BlockSpec((1, width), lambda n: (0, 0)),                 # b2
            pl.BlockSpec((width, cout), lambda n: (0, 0)),              # w3
            pl.BlockSpec((1, cout), lambda n: (0, 0)),                  # b3
        ],
        out_specs=pl.BlockSpec((1, H * W, cout), lambda n: (n, 0, 0)),
        scratch_shapes=[pltpu.VMEM((H + 2, W + 2, width), jnp.float32)],
        compiler_params=pltpu.CompilerParams(
            dimension_semantics=("parallel",)),
    )(x, w1m, b1, w2m, b2, w3m, b3)

    out = out.reshape(N, H, W, cout)
    return jnp.transpose(out, (0, 3, 1, 2))          # back to NCHW


# ---------------------------------------------------------------------------
# Pure-JAX reference (PyTorch eval-mode semantics) for a sanity check
# ---------------------------------------------------------------------------
def bottleneck_reference(x_nchw, params, stride=1, eps=1e-5):
    x = jnp.transpose(x_nchw, (0, 2, 3, 1))

    def bn(y, p):
        g, b, m, v = p
        return (y - m) * (g / jnp.sqrt(v + eps)) + b

    def conv(y, w_oihw, stride, pad):
        w = jnp.transpose(w_oihw, (2, 3, 1, 0))      # HWIO
        return lax.conv_general_dilated(
            y, w, (stride, stride), pad,
            dimension_numbers=("NHWC", "HWIO", "NHWC"))

    out = jax.nn.relu(bn(conv(x, params["w1"], 1, "VALID"), params["bn1"]))
    out = jax.nn.relu(bn(conv(out, params["w2"], stride, [(1, 1), (1, 1)]),
                         params["bn2"]))
    out = bn(conv(out, params["w3"], 1, "VALID"), params["bn3"])
    out = jax.nn.relu(out + x)
    return jnp.transpose(out, (0, 3, 1, 2))


if __name__ == "__main__":
    # planes=4 -> width=4, out channels = 16 = inplanes, so the identity
    # shortcut applies (downsample=None, stride=1), matching the module default.
    N, inplanes, planes, H, W = 2, 16, 4, 16, 16

    key = jax.random.PRNGKey(0)
    kx, kp = jax.random.split(key)
    x = jax.random.normal(kx, (N, inplanes, H, W), jnp.float32)   # NCHW input
    params, width, cout = make_bottleneck_params(kp, inplanes, planes)

    y = jax.block_until_ready(bottleneck_forward(x, params, stride=1))
    y_ref = jax.block_until_ready(bottleneck_reference(x, params, stride=1))

    assert y.shape == (N, cout, H, W)
    assert np.allclose(np.asarray(y), np.asarray(y_ref), rtol=2e-2, atol=2e-2), \
        float(np.abs(np.asarray(y) - np.asarray(y_ref)).max())

    print("KERNEL_OK")
</pallas_src>

<mosaic_0001>
module attributes {stable_mosaic.version = 11 : i64} {
  func.func @bottleneck_kernel(%arg0: i32, %arg1: memref<1x256x16xf32, #tpu.memory_space<vmem>>, %arg2: memref<16x4xbf16, #tpu.memory_space<vmem>>, %arg3: memref<1x4xf32, #tpu.memory_space<vmem>>, %arg4: memref<9x4x4xbf16, #tpu.memory_space<vmem>>, %arg5: memref<1x4xf32, #tpu.memory_space<vmem>>, %arg6: memref<4x16xbf16, #tpu.memory_space<vmem>>, %arg7: memref<1x16xf32, #tpu.memory_space<vmem>>, %arg8: memref<1x256x16xf32, #tpu.memory_space<vmem>>, %arg9: memref<18x18x4xf32, #tpu.memory_space<vmem>>) attributes {dimension_semantics = [#tpu.dimension_semantics<parallel>], iteration_bounds = array<i64: 2>, scalar_prefetch = 0 : i64, scratch_operands = 1 : i64, tpu.core_type = #tpu.core_type<tc>, window_params = [{transform_indices = @transform_0, window_bounds = array<i64: 1, 256, 16>}, {pipeline_mode = #tpu.pipeline_mode<synchronous>, transform_indices = @transform_1, window_bounds = array<i64: 16, 4>}, {pipeline_mode = #tpu.pipeline_mode<synchronous>, transform_indices = @transform_2, window_bounds = array<i64: 1, 4>}, {pipeline_mode = #tpu.pipeline_mode<synchronous>, transform_indices = @transform_3, window_bounds = array<i64: 9, 4, 4>}, {pipeline_mode = #tpu.pipeline_mode<synchronous>, transform_indices = @transform_4, window_bounds = array<i64: 1, 4>}, {pipeline_mode = #tpu.pipeline_mode<synchronous>, transform_indices = @transform_5, window_bounds = array<i64: 4, 16>}, {pipeline_mode = #tpu.pipeline_mode<synchronous>, transform_indices = @transform_6, window_bounds = array<i64: 1, 16>}, {transform_indices = @transform_7, window_bounds = array<i64: 1, 256, 16>}]} {
    %c0 = arith.constant 0 : index
    %c0_0 = arith.constant 0 : index
    %c0_1 = arith.constant 0 : index
    %0 = vector.load %arg1[%c0, %c0_0, %c0_1] : memref<1x256x16xf32, #tpu.memory_space<vmem>>, vector<1x256x16xf32>
    %1 = vector.shape_cast %0 : vector<1x256x16xf32> to vector<256x16xf32>
    %2 = arith.truncf %1 : vector<256x16xf32> to vector<256x16xbf16>
    %c0_2 = arith.constant 0 : index
    %c0_3 = arith.constant 0 : index
    %3 = vector.load %arg2[%c0_2, %c0_3] : memref<16x4xbf16, #tpu.memory_space<vmem>>, vector<16x4xbf16>
    %cst = arith.constant dense<0.000000e+00> : vector<256x4xf32>
    %4 = tpu.matmul %2, %3, %cst {dimension_numbers = #tpu.dot_dimension_numbers<[1], [0], [0], [1], [0, 0, 1, 1], [], []>} : vector<256x16xbf16>, vector<16x4xbf16>, vector<256x4xf32> -> vector<256x4xf32>
    %c0_4 = arith.constant 0 : index
    %c0_5 = arith.constant 0 : index
    %5 = vector.load %arg3[%c0_4, %c0_5] : memref<1x4xf32, #tpu.memory_space<vmem>>, vector<1x4xf32>
    %6 = vector.broadcast %5 : vector<1x4xf32> to vector<256x4xf32>
    %7 = arith.addf %4, %6 : vector<256x4xf32>
    %cst_6 = arith.constant 0.000000e+00 : f32
    %8 = vector.broadcast %cst_6 : f32 to vector<256x4xf32>
    %9 = arith.maximumf %7, %8 : vector<256x4xf32>
    %cst_7 = arith.constant 0.000000e+00 : f32
    %10 = vector.broadcast %cst_7 : f32 to vector<18x18x4xf32>
    %c0_8 = arith.constant 0 : index
    %c0_9 = arith.constant 0 : index
    %c0_10 = arith.constant 0 : index
    %11 = vector.load %arg9[%c0_8, %c0_9, %c0_10] : memref<18x18x4xf32, #tpu.memory_space<vmem>>, vector<18x18x4xf32>
    tpu.vector_store %arg9[%c0_8, %c0_9, %c0_10], %10 {strides = array<i32>} : memref<18x18x4xf32, #tpu.memory_space<vmem>>, vector<18x18x4xf32>,
    %12 = vector.shape_cast %9 : vector<256x4xf32> to vector<16x16x4xf32>
    %c1 = arith.constant 1 : index
    %c1_11 = arith.constant 1 : index
    %c0_12 = arith.constant 0 : index
    %13 = vector.load %arg9[%c1, %c1_11, %c0_12] : memref<18x18x4xf32, #tpu.memory_space<vmem>>, vector<16x16x4xf32>
    tpu.vector_store %arg9[%c1, %c1_11, %c0_12], %12 {strides = array<i32>} : memref<18x18x4xf32, #tpu.memory_space<vmem>>, vector<16x16x4xf32>,
    %cst_13 = arith.constant 0.000000e+00 : f32
    %14 = vector.broadcast %cst_13 : f32 to vector<256x4xf32>
    %c0_14 = arith.constant 0 : index
    %c0_15 = arith.constant 0 : index
    %c0_16 = arith.constant 0 : index
    %15 = vector.load %arg9[%c0_14, %c0_15, %c0_16] : memref<18x18x4xf32, #tpu.memory_space<vmem>>, vector<16x16x4xf32>
    %16 = vector.shape_cast %15 : vector<16x16x4xf32> to vector<256x4xf32>
    %17 = arith.truncf %16 : vector<256x4xf32> to vector<256x4xbf16>
    %c0_17 = arith.constant 0 : index
    %c0_18 = arith.constant 0 : index
    %c0_19 = arith.constant 0 : index
    %18 = vector.load %arg4[%c0_17, %c0_18, %c0_19] : memref<9x4x4xbf16, #tpu.memory_space<vmem>>, vector<1x4x4xbf16>
    %19 = vector.shape_cast %18 : vector<1x4x4xbf16> to vector<4x4xbf16>
    %cst_20 = arith.constant dense<0.000000e+00> : vector<256x4xf32>
    %20 = tpu.matmul %17, %19, %cst_20 {dimension_numbers = #tpu.dot_dimension_numbers<[1], [0], [0], [1], [0, 0, 1, 1], [], []>} : vector<256x4xbf16>, vector<4x4xbf16>, vector<256x4xf32> -> vector<256x4xf32>
    %21 = arith.addf %14, %20 : vector<256x4xf32>
    %c0_21 = arith.constant 0 : index
    %c1_22 = arith.constant 1 : index
    %c0_23 = arith.constant 0 : index
    %22 = vector.load %arg9[%c0_21, %c1_22, %c0_23] : memref<18x18x4xf32, #tpu.memory_space<vmem>>, vector<16x16x4xf32>
    %23 = vector.shape_cast %22 : vector<16x16x4xf32> to vector<256x4xf32>
    %24 = arith.truncf %23 : vector<256x4xf32> to vector<256x4xbf16>
    %c1_24 = arith.constant 1 : index
    %c0_25 = arith.constant 0 : index
    %c0_26 = arith.constant 0 : index
    %25 = vector.load %arg4[%c1_24, %c0_25, %c0_26] : memref<9x4x4xbf16, #tpu.memory_space<vmem>>, vector<1x4x4xbf16>
    %26 = vector.shape_cast %25 : vector<1x4x4xbf16> to vector<4x4xbf16>
    %cst_27 = arith.constant dense<0.000000e+00> : vector<256x4xf32>
    %27 = tpu.matmul %24, %26, %cst_27 {dimension_numbers = #tpu.dot_dimension_numbers<[1], [0], [0], [1], [0, 0, 1, 1], [], []>} : vector<256x4xbf16>, vector<4x4xbf16>, vector<256x4xf32> -> vector<256x4xf32>
    %28 = arith.addf %21, %27 : vector<256x4xf32>
    %c0_28 = arith.constant 0 : index
    %c2 = arith.constant 2 : index
    %c0_29 = arith.constant 0 : index
    %29 = vector.load %arg9[%c0_28, %c2, %c0_29] : memref<18x18x4xf32, #tpu.memory_space<vmem>>, vector<16x16x4xf32>
    %30 = vector.shape_cast %29 : vector<16x16x4xf32> to vector<256x4xf32>
    %31 = arith.truncf %30 : vector<256x4xf32> to vector<256x4xbf16>
    %c2_30 = arith.constant 2 : index
    %c0_31 = arith.constant 0 : index
    %c0_32 = arith.constant 0 : index
    %32 = vector.load %arg4[%c2_30, %c0_31, %c0_32] : memref<9x4x4xbf16, #tpu.memory_space<vmem>>, vector<1x4x4xbf16>
    %33 = vector.shape_cast %32 : vector<1x4x4xbf16> to vector<4x4xbf16>
    %cst_33 = arith.constant dense<0.000000e+00> : vector<256x4xf32>
    %34 = tpu.matmul %31, %33, %cst_33 {dimension_numbers = #tpu.dot_dimension_numbers<[1], [0], [0], [1], [0, 0, 1, 1], [], []>} : vector<256x4xbf16>, vector<4x4xbf16>, vector<256x4xf32> -> vector<256x4xf32>
    %35 = arith.addf %28, %34 : vector<256x4xf32>
    %c1_34 = arith.constant 1 : index
    %c0_35 = arith.constant 0 : index
    %c0_36 = arith.constant 0 : index
    %36 = vector.load %arg9[%c1_34, %c0_35, %c0_36] : memref<18x18x4xf32, #tpu.memory_space<vmem>>, vector<16x16x4xf32>
    %37 = vector.shape_cast %36 : vector<16x16x4xf32> to vector<256x4xf32>
    %38 = arith.truncf %37 : vector<256x4xf32> to vector<256x4xbf16>
    %c3 = arith.constant 3 : index
    %c0_37 = arith.constant 0 : index
    %c0_38 = arith.constant 0 : index
    %39 = vector.load %arg4[%c3, %c0_37, %c0_38] : memref<9x4x4xbf16, #tpu.memory_space<vmem>>, vector<1x4x4xbf16>
    %40 = vector.shape_cast %39 : vector<1x4x4xbf16> to vector<4x4xbf16>
    %cst_39 = arith.constant dense<0.000000e+00> : vector<256x4xf32>
    %41 = tpu.matmul %38, %40, %cst_39 {dimension_numbers = #tpu.dot_dimension_numbers<[1], [0], [0], [1], [0, 0, 1, 1], [], []>} : vector<256x4xbf16>, vector<4x4xbf16>, vector<256x4xf32> -> vector<256x4xf32>
    %42 = arith.addf %35, %41 : vector<256x4xf32>
    %c1_40 = arith.constant 1 : index
    %c1_41 = arith.constant 1 : index
    %c0_42 = arith.constant 0 : index
    %43 = vector.load %arg9[%c1_40, %c1_41, %c0_42] : memref<18x18x4xf32, #tpu.memory_space<vmem>>, vector<16x16x4xf32>
    %44 = vector.shape_cast %43 : vector<16x16x4xf32> to vector<256x4xf32>
    %45 = arith.truncf %44 : vector<256x4xf32> to vector<256x4xbf16>
    %c4 = arith.constant 4 : index
    %c0_43 = arith.constant 0 : index
    %c0_44 = arith.constant 0 : index
    %46 = vector.load %arg4[%c4, %c0_43, %c0_44] : memref<9x4x4xbf16, #tpu.memory_space<vmem>>, vector<1x4x4xbf16>
    %47 = vector.shape_cast %46 : vector<1x4x4xbf16> to vector<4x4xbf16>
    %cst_45 = arith.constant dense<0.000000e+00> : vector<256x4xf32>
    %48 = tpu.matmul %45, %47, %cst_45 {dimension_numbers = #tpu.dot_dimension_numbers<[1], [0], [0], [1], [0, 0, 1, 1], [], []>} : vector<256x4xbf16>, vector<4x4xbf16>, vector<256x4xf32> -> vector<256x4xf32>
    %49 = arith.addf %42, %48 : vector<256x4xf32>
    %c1_46 = arith.constant 1 : index
    %c2_47 = arith.constant 2 : index
    %c0_48 = arith.constant 0 : index
    %50 = vector.load %arg9[%c1_46, %c2_47, %c0_48] : memref<18x18x4xf32, #tpu.memory_space<vmem>>, vector<16x16x4xf32>
    %51 = vector.shape_cast %50 : vector<16x16x4xf32> to vector<256x4xf32>
    %52 = arith.truncf %51 : vector<256x4xf32> to vector<256x4xbf16>
    %c5 = arith.constant 5 : index
    %c0_49 = arith.constant 0 : index
    %c0_50 = arith.constant 0 : index
    %53 = vector.load %arg4[%c5, %c0_49, %c0_50] : memref<9x4x4xbf16, #tpu.memory_space<vmem>>, vector<1x4x4xbf16>
    %54 = vector.shape_cast %53 : vector<1x4x4xbf16> to vector<4x4xbf16>
    %cst_51 = arith.constant dense<0.000000e+00> : vector<256x4xf32>
    %55 = tpu.matmul %52, %54, %cst_51 {dimension_numbers = #tpu.dot_dimension_numbers<[1], [0], [0], [1], [0, 0, 1, 1], [], []>} : vector<256x4xbf16>, vector<4x4xbf16>, vector<256x4xf32> -> vector<256x4xf32>
    %56 = arith.addf %49, %55 : vector<256x4xf32>
    %c2_52 = arith.constant 2 : index
    %c0_53 = arith.constant 0 : index
    %c0_54 = arith.constant 0 : index
    %57 = vector.load %arg9[%c2_52, %c0_53, %c0_54] : memref<18x18x4xf32, #tpu.memory_space<vmem>>, vector<16x16x4xf32>
    %58 = vector.shape_cast %57 : vector<16x16x4xf32> to vector<256x4xf32>
    %59 = arith.truncf %58 : vector<256x4xf32> to vector<256x4xbf16>
    %c6 = arith.constant 6 : index
    %c0_55 = arith.constant 0 : index
    %c0_56 = arith.constant 0 : index
    %60 = vector.load %arg4[%c6, %c0_55, %c0_56] : memref<9x4x4xbf16, #tpu.memory_space<vmem>>, vector<1x4x4xbf16>
    %61 = vector.shape_cast %60 : vector<1x4x4xbf16> to vector<4x4xbf16>
    %cst_57 = arith.constant dense<0.000000e+00> : vector<256x4xf32>
    %62 = tpu.matmul %59, %61, %cst_57 {dimension_numbers = #tpu.dot_dimension_numbers<[1], [0], [0], [1], [0, 0, 1, 1], [], []>} : vector<256x4xbf16>, vector<4x4xbf16>, vector<256x4xf32> -> vector<256x4xf32>
    %63 = arith.addf %56, %62 : vector<256x4xf32>
    %c2_58 = arith.constant 2 : index
    %c1_59 = arith.constant 1 : index
    %c0_60 = arith.constant 0 : index
    %64 = vector.load %arg9[%c2_58, %c1_59, %c0_60] : memref<18x18x4xf32, #tpu.memory_space<vmem>>, vector<16x16x4xf32>
    %65 = vector.shape_cast %64 : vector<16x16x4xf32> to vector<256x4xf32>
    %66 = arith.truncf %65 : vector<256x4xf32> to vector<256x4xbf16>
    %c7 = arith.constant 7 : index
    %c0_61 = arith.constant 0 : index
    %c0_62 = arith.constant 0 : index
    %67 = vector.load %arg4[%c7, %c0_61, %c0_62] : memref<9x4x4xbf16, #tpu.memory_space<vmem>>, vector<1x4x4xbf16>
    %68 = vector.shape_cast %67 : vector<1x4x4xbf16> to vector<4x4xbf16>
    %cst_63 = arith.constant dense<0.000000e+00> : vector<256x4xf32>
    %69 = tpu.matmul %66, %68, %cst_63 {dimension_numbers = #tpu.dot_dimension_numbers<[1], [0], [0], [1], [0, 0, 1, 1], [], []>} : vector<256x4xbf16>, vector<4x4xbf16>, vector<256x4xf32> -> vector<256x4xf32>
    %70 = arith.addf %63, %69 : vector<256x4xf32>
    %c2_64 = arith.constant 2 : index
    %c2_65 = arith.constant 2 : index
    %c0_66 = arith.constant 0 : index
    %71 = vector.load %arg9[%c2_64, %c2_65, %c0_66] : memref<18x18x4xf32, #tpu.memory_space<vmem>>, vector<16x16x4xf32>
    %72 = vector.shape_cast %71 : vector<16x16x4xf32> to vector<256x4xf32>
    %73 = arith.truncf %72 : vector<256x4xf32> to vector<256x4xbf16>
    %c8 = arith.constant 8 : index
    %c0_67 = arith.constant 0 : index
    %c0_68 = arith.constant 0 : index
    %74 = vector.load %arg4[%c8, %c0_67, %c0_68] : memref<9x4x4xbf16, #tpu.memory_space<vmem>>, vector<1x4x4xbf16>
    %75 = vector.shape_cast %74 : vector<1x4x4xbf16> to vector<4x4xbf16>
    %cst_69 = arith.constant dense<0.000000e+00> : vector<256x4xf32>
    %76 = tpu.matmul %73, %75, %cst_69 {dimension_numbers = #tpu.dot_dimension_numbers<[1], [0], [0], [1], [0, 0, 1, 1], [], []>} : vector<256x4xbf16>, vector<4x4xbf16>, vector<256x4xf32> -> vector<256x4xf32>
    %77 = arith.addf %70, %76 : vector<256x4xf32>
    %c0_70 = arith.constant 0 : index
    %c0_71 = arith.constant 0 : index
    %78 = vector.load %arg5[%c0_70, %c0_71] : memref<1x4xf32, #tpu.memory_space<vmem>>, vector<1x4xf32>
    %79 = vector.broadcast %78 : vector<1x4xf32> to vector<256x4xf32>
    %80 = arith.addf %77, %79 : vector<256x4xf32>
    %cst_72 = arith.constant 0.000000e+00 : f32
    %81 = vector.broadcast %cst_72 : f32 to vector<256x4xf32>
    %82 = arith.maximumf %80, %81 : vector<256x4xf32>
    %83 = arith.truncf %82 : vector<256x4xf32> to vector<256x4xbf16>
    %c0_73 = arith.constant 0 : index
    %c0_74 = arith.constant 0 : index
    %84 = vector.load %arg6[%c0_73, %c0_74] : memref<4x16xbf16, #tpu.memory_space<vmem>>, vector<4x16xbf16>
    %cst_75 = arith.constant dense<0.000000e+00> : vector<256x16xf32>
    %85 = tpu.matmul %83, %84, %cst_75 {dimension_numbers = #tpu.dot_dimension_numbers<[1], [0], [0], [1], [0, 0, 1, 1], [], []>} : vector<256x4xbf16>, vector<4x16xbf16>, vector<256x16xf32> -> vector<256x16xf32>
    %c0_76 = arith.constant 0 : index
    %c0_77 = arith.constant 0 : index
    %86 = vector.load %arg7[%c0_76, %c0_77] : memref<1x16xf32, #tpu.memory_space<vmem>>, vector<1x16xf32>
    %87 = vector.broadcast %86 : vector<1x16xf32> to vector<256x16xf32>
    %88 = arith.addf %85, %87 : vector<256x16xf32>
    %89 = arith.addf %88, %1 : vector<256x16xf32>
    %cst_78 = arith.constant 0.000000e+00 : f32
    %90 = vector.broadcast %cst_78 : f32 to vector<256x16xf32>
    %91 = arith.maximumf %89, %90 : vector<256x16xf32>
    %c0_79 = arith.constant 0 : index
    %c0_80 = arith.constant 0 : index
    %c0_81 = arith.constant 0 : index
    %92 = vector.load %arg8[%c0_79, %c0_80, %c0_81] : memref<1x256x16xf32, #tpu.memory_space<vmem>>, vector<1x256x16xf32>
    %93 = vector.shape_cast %92 : vector<1x256x16xf32> to vector<256x16xf32>
    %94 = vector.shape_cast %91 : vector<256x16xf32> to vector<1x256x16xf32>
    tpu.vector_store %arg8[%c0_79, %c0_80, %c0_81], %94 {strides = array<i32>} : memref<1x256x16xf32, #tpu.memory_space<vmem>>, vector<1x256x16xf32>,
    return
  }
  func.func @transform_0(%arg0: i32) -> (i32, i32, i32) {
    %c0_i32 = arith.constant 0 : i32
    %c0_i32_0 = arith.constant 0 : i32
    %c0_i32_1 = arith.constant 0 : i32
    return %arg0, %c0_i32, %c0_i32_0 : i32, i32, i32
  }
  func.func @transform_1(%arg0: i32) -> (i32, i32) {
    %c0_i32 = arith.constant 0 : i32
    %c0_i32_0 = arith.constant 0 : i32
    %c0_i32_1 = arith.constant 0 : i32
    return %c0_i32, %c0_i32_0 : i32, i32
  }
  func.func @transform_2(%arg0: i32) -> (i32, i32) {
    %c0_i32 = arith.constant 0 : i32
    %c0_i32_0 = arith.constant 0 : i32
    %c0_i32_1 = arith.constant 0 : i32
    return %c0_i32, %c0_i32_0 : i32, i32
  }
  func.func @transform_3(%arg0: i32) -> (i32, i32, i32) {
    %c0_i32 = arith.constant 0 : i32
    %c0_i32_0 = arith.constant 0 : i32
    %c0_i32_1 = arith.constant 0 : i32
    %c0_i32_2 = arith.constant 0 : i32
    return %c0_i32, %c0_i32_0, %c0_i32_1 : i32, i32, i32
  }
  func.func @transform_4(%arg0: i32) -> (i32, i32) {
    %c0_i32 = arith.constant 0 : i32
    %c0_i32_0 = arith.constant 0 : i32
    %c0_i32_1 = arith.constant 0 : i32
    return %c0_i32, %c0_i32_0 : i32, i32
  }
  func.func @transform_5(%arg0: i32) -> (i32, i32) {
    %c0_i32 = arith.constant 0 : i32
    %c0_i32_0 = arith.constant 0 : i32
    %c0_i32_1 = arith.constant 0 : i32
    return %c0_i32, %c0_i32_0 : i32, i32
  }
  func.func @transform_6(%arg0: i32) -> (i32, i32) {
    %c0_i32 = arith.constant 0 : i32
    %c0_i32_0 = arith.constant 0 : i32
    %c0_i32_1 = arith.constant 0 : i32
    return %c0_i32, %c0_i32_0 : i32, i32
  }
  func.func @transform_7(%arg0: i32) -> (i32, i32, i32) {
    %c0_i32 = arith.constant 0 : i32
    %c0_i32_0 = arith.constant 0 : i32
    %c0_i32_1 = arith.constant 0 : i32
    return %arg0, %c0_i32, %c0_i32_0 : i32, i32, i32
  }
}

</mosaic_0001>

<bundles_post_ra>
// kernel: tpu_custom_call.1
= control target key start
LH: loop header
LB: loop body
LE: loop exit
PB: predicated region body
PF: predicated region fallthrough
CT: control target
= control target key end

     0   :  { %s3212_s24 = smov 0   ;;  %s4586_s0 = inlined_call_operand.vmem [shape: f32[2,256,16], index: 0, kind: input, shape index: {}]   ;;  %s4587_s1 = inlined_call_operand.vmem [shape: bf16[16,4], index: 1, kind: input, shape index: {}]   ;;  %s4588_s2 = inlined_call_operand.vmem [shape: f32[1,4], index: 2, kind: input, shape index: {}]   ;;  %s4589_s3 = inlined_call_operand.vmem [shape: bf16[9,4,4], index: 3, kind: input, shape index: {}]   ;;  %s4590_s4 = inlined_call_operand.vmem [shape: f32[1,4], index: 4, kind: input, shape index: {}]   ;;  %s4591_s5 = inlined_call_operand.vmem [shape: bf16[4,16], index: 5, kind: input, shape index: {}]   ;;  %s4592_s6 = inlined_call_operand.vmem [shape: f32[1,16], index: 6, kind: input, shape index: {}]   ;;  %s4593_s7 = inlined_call_operand.vmem [shape: f32[2,256,16], index: 7, kind: output, shape index: {}]  }
   0x1 LB: > { %s2914_s25 = sadd.s32 4294967295, %s3169_s24   ;;  %p2918_p0 = scmp.ge.s32.totalorder %s3169_s24, 1  ;;  %s3169_s24 = sphi %s3212_s24, %s17_s24  }
   0x2   : > { %p237_p1 = scmp.lt.s32.totalorder %s3169_s24, 3 }
   0x4   : > { %p238_p2 = pnand %p2918_p0, %p237_p1 }
   0x6   : > { %241 = sbr.rel (%p238_p2) target bundleno = 1266 (0x4f2), region = 48 }
   0xb   : > { %v3115_v0 = vld [vmem:[%s4587_s1] sm:$0xff]  ;;  %p269_p3 = scmp.lt.s32.totalorder %s2914_s25, 1  ;;  %vm340_vm0 = vcmask 130048   ;;  %vm510_vm1 = vcmask 31744   ;;  %v3171_v21 = vmov 0.0   ;;  %vm746_vm2 = vcmask 1041408  }
   0xc   : > { %396 = vmatpush.bf16.msra.mxu0 %v3115_v0  ;;  %3116 = vmatpush.bf16.msra.mxu3 %v3115_v0  ;;  %515 = vst.msk [vmem:[#allocation2 + $0x18] sm:$0xff] %vm510_vm1, %v3171_v21  ;;  %v2943_v23 = vld [vmem:[%s4589_s3 + $0x2] sm:$0x3]  ;;  %v647_v24 = vld [vmem:[%s4589_s3] sm:$0x3]  ;;  %vm513_vm3 = vcmask 25600  }
   0xd   : > { %s4755_s25 = smov (!%p269_p3, %s2914_s25), 1  ;;  %516 = vst.msk [vmem:[#allocation2 + $0x20] sm:$0xff] %vm510_vm1, %v3171_v21  ;;  %v748_v25 = vsel %vm746_vm2, %v2943_v23, 0  ;;  %v3276_v26 = vsel %vm746_vm2, %v647_v24, 0  ;;  %v3338_v35 = vld [vmem:[%s4588_s2] ss:$0 sm:$0xff] }
   0xe   : > { %s3113_s28 = sshll.u32 %s4755_s25, 8  ;;  %511 = vst.msk [vmem:[#allocation2] sm:$0xff] %vm510_vm1, %v3171_v21  ;;  %757 = vmatpush.bf16.msra.mxu1 %v748_v25  ;;  %897 = vmatpush.bf16.msra.mxu2 %v3276_v26 }
   0xf   : > { %s3231_s8 = scalar_lea.vmem %s4586_s0, %s3113_s28  ;;  %512 = vst.msk [vmem:[#allocation2 + $0x8] sm:$0xff] %vm510_vm1, %v3171_v21  ;;  %s4389_s18 = scalar_lea.vmem %s4593_s7, %s3113_s28 }
  0x10   : > { %v280_v1 = vld [vmem:[%s3231_s8] sm:$0xff]  ;;  %v281_v2 = vld [vmem:[%s3231_s8 + $0x8] sm:$0xff]  ;;  %v282_v4 = vld [vmem:[%s3231_s8 + $0x10] sm:$0xff]  ;;  %518 = vst.msk [vmem:[#allocation2 + $0x30] sm:$0xff] %vm510_vm1, %v3171_v21  ;;  %3117 = vmatpush.bf16.msrb.mxu3 %v748_v25 }
  0x11   : > { %v312_v3 = vpack.c.bf16 %v281_v2, %v280_v1  ;;  %v283_v5 = vld [vmem:[%s3231_s8 + $0x18] sm:$0xff]  ;;  %v284_v7 = vld [vmem:[%s3231_s8 + $0x20] sm:$0xff]  ;;  %v285_v8 = vld [vmem:[%s3231_s8 + $0x28] sm:$0xff]  ;;  %519 = vst.msk [vmem:[#allocation2 + $0x38] sm:$0xff] %vm510_vm1, %v3171_v21 }
  0x12   : > { %v313_v6 = vpack.c.bf16 %v283_v5, %v282_v4  ;;  %v314_v9 = vpack.c.bf16 %v285_v8, %v284_v7  ;;  %v286_v10 = vld [vmem:[%s3231_s8 + $0x30] sm:$0xff]  ;;  %v287_v11 = vld [vmem:[%s3231_s8 + $0x38] sm:$0xff]  ;;  %v288_v13 = vld [vmem:[%s3231_s8 + $0x40] sm:$0xff]  ;;  %521 = vst.msk [vmem:[#allocation2 + $0x48] sm:$0xff] %vm510_vm1, %v3171_v21 }
  0x13   : > { %2927 = vmatmul.msk.bf16.vlgmr.msra.gmra.mxu0 %vm340_vm0, %v312_v3  ;;  %v315_v12 = vpack.c.bf16 %v287_v11, %v286_v10  ;;  %v289_v14 = vld [vmem:[%s3231_s8 + $0x48] sm:$0xff]  ;;  %v290_v16 = vld [vmem:[%s3231_s8 + $0x50] sm:$0xff]  ;;  %v291_v17 = vld [vmem:[%s3231_s8 + $0x58] sm:$0xff]  ;;  %522 = vst.msk [vmem:[#allocation2 + $0x50] sm:$0xff] %vm510_vm1, %v3171_v21 }
  0x14   : > { %v316_v15 = vpack.c.bf16 %v289_v14, %v288_v13  ;;  %v317_v18 = vpack.c.bf16 %v291_v17, %v290_v16  ;;  %v292_v19 = vld [vmem:[%s3231_s8 + $0x60] sm:$0xff]  ;;  %v293_v20 = vld [vmem:[%s3231_s8 + $0x68] sm:$0xff]  ;;  %524 = vst.msk [vmem:[#allocation2 + $0x60] sm:$0xff] %vm510_vm1, %v3171_v21  ;;  %v294_v30 = vld [vmem:[%s3231_s8 + $0x70] sm:$0xff] }
  0x15   : > { %v318_v22 = vpack.c.bf16 %v293_v20, %v292_v19  ;;  %525 = vst.msk [vmem:[#allocation2 + $0x68] sm:$0xff] %vm510_vm1, %v3171_v21  ;;  %v599_v27 = vld [vmem:[#allocation2] sm:$0xff]  ;;  %v295_v31 = vld [vmem:[%s3231_s8 + $0x78] sm:$0xff]  ;;  %v297_v34 = vld [vmem:[%s3231_s8 + $0x88] sm:$0xff] }
  0x16   : > { %527 = vst.msk [vmem:[#allocation2 + $0x78] sm:$0xff] %vm510_vm1, %v3171_v21  ;;  %v600_v28 = vld [vmem:[#allocation2 + $0x8] sm:$0xff]  ;;  %v319_v32 = vpack.c.bf16 %v295_v31, %v294_v30  ;;  %v296_v33 = vld [vmem:[%s3231_s8 + $0x80] sm:$0xff]  ;;  %v298_v45 = vld [vmem:[%s3231_s8 + $0x90] sm:$0xff] }
  0x17   : > { %528 = vst.msk [vmem:[#allocation2 + $0x80] sm:$0xff] %vm510_vm1, %v3171_v21  ;;  %v631_v29 = vpack.c.bf16 %v600_v28, %v599_v27  ;;  %v320_v36 = vpack.c.bf16 %v297_v34, %v296_v33  ;;  %v648_v40 = vld [vmem:[#allocation2 + $0x1] sm:$0xff]  ;;  %v299_v46 = vld [vmem:[%s3231_s8 + $0x98] sm:$0xff]  ;;  %v306_v7 = vld [vmem:[%s3231_s8 + $0xd0] sm:$0xff] }
  0x18   : > { %530 = vst.msk [vmem:[#allocation2 + $0x90] sm:$0xff] %vm510_vm1, %v3171_v21  ;;  %v321_v47 = vpack.c.bf16 %v299_v46, %v298_v45  ;;  %v304_v52 = vld [vmem:[%s3231_s8 + $0xc0] sm:$0xff]  ;;  %v305_v53 = vld [vmem:[%s3231_s8 + $0xc8] sm:$0xff]  ;;  %v307_v8 = vld [vmem:[%s3231_s8 + $0xd8] sm:$0xff] }
  0x19   : > { %531 = vst.msk [vmem:[#allocation2 + $0x98] sm:$0xff] %vm510_vm1, %v3171_v21  ;;  %2960 = vmatmul.msk.bf16.vlgmr.msra.gmra.mxu2 %vm510_vm1, %v631_v29  ;;  %v324_v54 = vpack.c.bf16 %v305_v53, %v304_v52  ;;  %v300_v0 = vld [vmem:[%s3231_s8 + $0xa0] sm:$0xff]  ;;  %v301_v1 = vld [vmem:[%s3231_s8 + $0xa8] sm:$0xff]  ;;  %v325_v10 = vpack.c.bf16 %v307_v8, %v306_v7  ;;  %v302_v20 = vld [vmem:[%s3231_s8 + $0xb0] sm:$0xff] }
  0x1a   : > { %533 = vst.msk [vmem:[#allocation2 + $0xa8] sm:$0xff] %vm510_vm1, %v3171_v21  ;;  %v322_v2 = vpack.c.bf16 %v301_v1, %v300_v0  ;;  %v309_v27 = vld [vmem:[%s3231_s8 + $0xe8] sm:$0xff] }
  0x1b   : > { %534 = vst.msk [vmem:[#allocation2 + $0xb0] sm:$0xff] %vm510_vm1, %v3171_v21  ;;  %2939 = vmatmul.msk.bf16.vlgmr.msra.gmra.mxu3 %vm340_vm0, %v324_v54 }
  0x1c   : > { %536 = vst.msk [vmem:[#allocation2 + $0xc0] sm:$0xff] %vm510_vm1, %v3171_v21  ;;  %3118 = vmatpush.bf16.msra.mxu3 %v3276_v26  ;;  %v308_v26 = vld [vmem:[%s3231_s8 + $0xe0] sm:$0xff] }
  0x1d   : > { %537 = vst.msk [vmem:[#allocation2 + $0xc8] sm:$0xff] %vm510_vm1, %v3171_v21  ;;  %v326_v28 = vpack.c.bf16 %v309_v27, %v308_v26  ;;  %v310_v27 = vld [vmem:[%s3231_s8 + $0xf0] sm:$0xff] }
  0x1e   : > { %539 = vst.msk [vmem:[#allocation2 + $0xd8] sm:$0xff] %vm510_vm1, %v3171_v21 }
  0x1f   : > { %540 = vst.msk [vmem:[#allocation2 + $0xe0] sm:$0xff] %vm510_vm1, %v3171_v21 }
  0x20   : > { %542 = vst.msk [vmem:[#allocation2 + $0xf0] sm:$0xff] %vm510_vm1, %v3171_v21 }
  0x21   : > { %543 = vst.msk [vmem:[#allocation2 + $0xf8] sm:$0xff] %vm510_vm1, %v3171_v21 }
  0x22   : > { %545 = vst.msk [vmem:[#allocation2 + $0x108] sm:$0xff] %vm510_vm1, %v3171_v21 }
  0x23   : > { %2928 = vmatmul.msk.bf16.gmra.mxu0 %vm340_vm0, %v313_v6  ;;  %546 = vst.msk [vmem:[#allocation2 + $0x110] sm:$0xff] %vm510_vm1, %v3171_v21  ;;  %v2993_v6 = vld [vmem:[%s4589_s3 + $0x6] sm:$0x3] }
  0x24   : > { %548 = vst.msk [vmem:[#allocation2 + $0x120] sm:$0xff] %vm510_vm1, %v3171_v21 }
  0x25   : > { %549 = vst.msk [vmem:[#allocation2 + $0x128] sm:$0xff] %vm510_vm1, %v3171_v21 }
  0x26   : > { %551 = vst.msk [vmem:[#allocation2 + $0x138] sm:$0xff] %vm510_vm1, %v3171_v21 }
  0x27   : > { %552 = vst.msk [vmem:[#allocation2 + $0x140] sm:$0xff] %vm510_vm1, %v3171_v21 }
  0x28   : > { %554 = vst.msk [vmem:[#allocation2 + $0x150] sm:$0xff] %vm510_vm1, %v3171_v21 }
  0x29   : > { %555 = vst.msk [vmem:[#allocation2 + $0x158] sm:$0xff] %vm510_vm1, %v3171_v21 }
  0x2a   : > { %557 = vst.msk [vmem:[#allocation2 + $0x168] sm:$0xff] %vm510_vm1, %v3171_v21 }
  0x2b   : > { %558 = vst.msk [vmem:[#allocation2 + $0x170] sm:$0xff] %vm510_vm1, %v3171_v21  ;;  %2940 = vmatmul.msk.bf16.gmra.mxu3 %vm340_vm0, %v325_v10 }
  0x2c   : > { %560 = vst.msk [vmem:[#allocation2 + $0x180] sm:$0xff] %vm510_vm1, %v3171_v21 }
  0x2d   : > { %561 = vst.msk [vmem:[#allocation2 + $0x188] sm:$0xff] %vm510_vm1, %v3171_v21 }
  0x2e   : > { %563 = vst.msk [vmem:[#allocation2 + $0x198] sm:$0xff] %vm510_vm1, %v3171_v21 }
  0x2f   : > { %564 = vst.msk [vmem:[#allocation2 + $0x1a0] sm:$0xff] %vm510_vm1, %v3171_v21 }
  0x30   : > { %514 = vst.msk [vmem:[#allocation2 + $0x10] sm:$0x3] %vm513_vm3, %v3171_v21 }
  0x31   : > { %517 = vst.msk [vmem:[#allocation2 + $0x28] sm:$0x3] %vm513_vm3, %v3171_v21 }
  0x32   : > { %520 = vst.msk [vmem:[#allocation2 + $0x40] sm:$0x3] %vm513_vm3, %v3171_v21 }
  0x33   : > { %2929 = vmatmul.msk.bf16.gmra.mxu0 %vm340_vm0, %v314_v9  ;;  %523 = vst.msk [vmem:[#allocation2 + $0x58] sm:$0x3] %vm513_vm3, %v3171_v21  ;;  %v1300_v9 = vsel %vm746_vm2, %v2993_v6, 0 }
  0x34   : > { %526 = vst.msk [vmem:[#allocation2 + $0x70] sm:$0x3] %vm513_vm3, %v3171_v21  ;;  %1309 = vmatpush.bf16.msrb.mxu0 %v1300_v9 }
  0x35   : > { %529 = vst.msk [vmem:[#allocation2 + $0x88] sm:$0x3] %vm513_vm3, %v3171_v21 }
  0x36   : > { %532 = vst.msk [vmem:[#allocation2 + $0xa0] sm:$0x3] %vm513_vm3, %v3171_v21 }
  0x37   : > { %v649_v41 = vld [vmem:[#allocation2 + $0x9] sm:$0xff]  ;;  %535 = vst.msk [vmem:[#allocation2 + $0xb8] sm:$0x3] %vm513_vm3, %v3171_v21 }
  0x38   : > { %v680_v43 = vpack.c.bf16 %v649_v41, %v648_v40  ;;  %538 = vst.msk [vmem:[#allocation2 + $0xd0] sm:$0x3] %vm513_vm3, %v3171_v21 }
  0x39   : > { %541 = vst.msk [vmem:[#allocation2 + $0xe8] sm:$0x3] %vm513_vm3, %v3171_v21 }
  0x3a   : > { %2944 = vmatmul.msk.bf16.vlgmr.msra.gmra.mxu1 %vm510_vm1, %v680_v43  ;;  %544 = vst.msk [vmem:[#allocation2 + $0x100] sm:$0x3] %vm513_vm3, %v3171_v21 }
  0x3b   : > { %547 = vst.msk [vmem:[#allocation2 + $0x118] sm:$0x3] %vm513_vm3, %v3171_v21  ;;  %2941 = vmatmul.msk.bf16.gmra.mxu3 %vm340_vm0, %v326_v28  ;;  %v311_v28 = vld [vmem:[%s3231_s8 + $0xf8] sm:$0xff] }
  0x3c   : > { %550 = vst.msk [vmem:[#allocation2 + $0x130] sm:$0x3] %vm513_vm3, %v3171_v21 }
  0x3d   : > { %553 = vst.msk [vmem:[#allocation2 + $0x148] sm:$0x3] %vm513_vm3, %v3171_v21 }
  0x3e   : > { %556 = vst.msk [vmem:[#allocation2 + $0x160] sm:$0x3] %vm513_vm3, %v3171_v21 }
  0x3f   : > { %559 = vst.msk [vmem:[#allocation2 + $0x178] sm:$0x3] %vm513_vm3, %v3171_v21 }
  0x40   : > { %562 = vst.msk [vmem:[#allocation2 + $0x190] sm:$0x3] %vm513_vm3, %v3171_v21 }
  0x41   : > { %565 = vst.msk [vmem:[#allocation2 + $0x1a8] sm:$0x3] %vm513_vm3, %v3171_v21  ;;  %v303_v21 = vld [vmem:[%s3231_s8 + $0xb8] sm:$0xff] }
  0x43   : > { %2930 = vmatmul.msk.bf16.gmra.mxu0 %vm340_vm0, %v315_v12 }
  0x53   : > { %2931 = vmatmul.msk.bf16.gmra.mxu0 %vm340_vm0, %v316_v15 }
  0x63   : > { %2932 = vmatmul.msk.bf16.gmra.mxu0 %vm340_vm0, %v317_v18 }
  0x73   : > { %2933 = vmatmul.msk.bf16.gmra.mxu0 %vm340_vm0, %v318_v22  ;;  %v323_v22 = vpack.c.bf16 %v303_v21, %v302_v20 }
  0x83   : > { %2934 = vmatmul.msk.bf16.gmra.mxu0 %vm340_vm0, %v319_v32 }
  0x90   : > { %v398_v37 = vpop.f32.mrf.mxu0 }
  0x91   : > { %v399_v38 = vadd.f32 %v3338_v35, %v398_v37 }
  0x93   : > { %v478_v39 = vmax.f32 %v399_v38, 0.0  ;;  %2935 = vmatmul.msk.bf16.gmra.mxu0 %vm340_vm0, %v320_v36 }
  0x95   : > { %567 = vst.msk [vmem:[#allocation2 + $0x19] sm:$0xff] %vm510_vm1, %v478_v39 }
  0x98   : > { %v400_v42 = vpop.f32.mrf.mxu0 }
  0x99   : > { %v401_v44 = vadd.f32 %v3338_v35, %v400_v42 }
  0x9b   : > { %v479_v48 = vmax.f32 %v401_v44, 0.0 }
  0x9c   : > { %v650_v57 = vld [vmem:[#allocation2 + $0x19] sm:$0xff] }
  0x9d   : > { %568 = vst.msk [vmem:[#allocation2 + $0x21] sm:$0xff] %vm510_vm1, %v479_v48  ;;  %v601_v59 = vld [vmem:[#allocation2 + $0x18] sm:$0xff] }
  0xa0   : > { %v403_v49 = vpop.f32.mrf.mxu0 }
  0xa1   : > { %v404_v50 = vadd.f32 %v3338_v35, %v403_v49 }
  0xa3   : > { %v480_v51 = vmax.f32 %v404_v50, 0.0  ;;  %2936 = vmatmul.msk.bf16.gmra.mxu0 %vm340_vm0, %v321_v47 }
  0xa4   : > { %v651_v58 = vld [vmem:[#allocation2 + $0x21] sm:$0xff] }
  0xa5   : > { %569 = vst.msk [vmem:[#allocation2 + $0x31] sm:$0xff] %vm510_vm1, %v480_v51  ;;  %v602_v60 = vld [vmem:[#allocation2 + $0x20] sm:$0xff]  ;;  %v3400_v62 = vpack.c.bf16 %v651_v58, %v650_v57 }
  0xa6   : > { %v632_v63 = vpack.c.bf16 %v602_v60, %v601_v59 }
  0xa7   : > { %2945 = vmatmul.msk.bf16.gmra.mxu1 %vm510_vm1, %v3400_v62 }
  0xa8   : > { %v405_v55 = vpop.f32.mrf.mxu0  ;;  %2961 = vmatmul.msk.bf16.gmra.mxu2 %vm510_vm1, %v632_v63 }
  0xa9   : > { %v406_v56 = vadd.f32 %v3338_v35, %v405_v55 }
  0xab   : > { %v481_v61 = vmax.f32 %v406_v56, 0.0 }
  0xac   : > { %v652_v14 = vld [vmem:[#allocation2 + $0x31] sm:$0xff] }
  0xad   : > { %570 = vst.msk [vmem:[#allocation2 + $0x39] sm:$0xff] %vm510_vm1, %v481_v61  ;;  %v603_v15 = vld [vmem:[#allocation2 + $0x30] sm:$0xff] }
  0xb0   : > { %v408_v3 = vpop.f32.mrf.mxu0 }
  0xb1   : > { %v409_v4 = vadd.f32 %v3338_v35, %v408_v3 }
  0xb3   : > { %v482_v5 = vmax.f32 %v409_v4, 0.0  ;;  %2937 = vmatmul.msk.bf16.gmra.mxu0 %vm340_vm0, %v322_v2 }
  0xb4   : > { %v653_v11 = vld [vmem:[#allocation2 + $0x39] sm:$0xff] }
  0xb5   : > { %571 = vst.msk [vmem:[#allocation2 + $0x49] sm:$0xff] %vm510_vm1, %v482_v5  ;;  %v604_v12 = vld [vmem:[#allocation2 + $0x38] sm:$0xff]  ;;  %v3419_v17 = vpack.c.bf16 %v653_v11, %v652_v14 }
  0xb6   : > { %v633_v18 = vpack.c.bf16 %v604_v12, %v603_v15  ;;  %v3010_v15 = vld [vmem:[%s4589_s3 + $0x8] sm:$0x3] }
  0xb7   : > { %2946 = vmatmul.msk.bf16.gmra.mxu1 %vm510_vm1, %v3419_v17 }
  0xb8   : > { %v410_v13 = vpop.f32.mrf.mxu0  ;;  %2962 = vmatmul.msk.bf16.gmra.mxu2 %vm510_vm1, %v633_v18 }
  0xb9   : > { %v411_v16 = vadd.f32 %v3338_v35, %v410_v13 }
  0xbb   : > { %v483_v19 = vmax.f32 %v411_v16, 0.0  ;;  %v1522_v16 = vsel %vm746_vm2, %v3010_v15, 0 }
  0xbc   : > { %v654_v32 = vld [vmem:[#allocation2 + $0x49] sm:$0xff]  ;;  %1531 = vmatpush.bf16.msrb.mxu1 %v1522_v16 }
  0xbd   : > { %572 = vst.msk [vmem:[#allocation2 + $0x51] sm:$0xff] %vm510_vm1, %v483_v19  ;;  %v605_v33 = vld [vmem:[#allocation2 + $0x48] sm:$0xff] }
  0xc0   : > { %v413_v23 = vpop.f32.mrf.mxu0 }
  0xc1   : > { %v414_v24 = vadd.f32 %v3338_v35, %v413_v23 }
  0xc3   : > { %v484_v25 = vmax.f32 %v414_v24, 0.0  ;;  %2938 = vmatmul.msk.bf16.gmra.mxu0 %vm340_vm0, %v323_v22 }
  0xc4   : > { %v655_v29 = vld [vmem:[#allocation2 + $0x51] sm:$0xff] }
  0xc5   : > { %573 = vst.msk [vmem:[#allocation2 + $0x61] sm:$0xff] %vm510_vm1, %v484_v25  ;;  %v606_v30 = vld [vmem:[#allocation2 + $0x50] sm:$0xff]  ;;  %v3434_v36 = vpack.c.bf16 %v655_v29, %v654_v32  ;;  %v327_v29 = vpack.c.bf16 %v311_v28, %v310_v27 }
  0xc6   : > { %v634_v37 = vpack.c.bf16 %v606_v30, %v605_v33  ;;  %v899_v33 = vpop.f32.mrf.mxu2 }
  0xc7   : > { %2947 = vmatmul.msk.bf16.gmra.mxu1 %vm510_vm1, %v3434_v36  ;;  %2942 = vmatmul.msk.bf16.gmra.mxu3 %vm340_vm0, %v327_v29 }
  0xc8   : > { %v415_v31 = vpop.f32.mrf.mxu0  ;;  %2963 = vmatmul.msk.bf16.gmra.mxu2 %vm510_vm1, %v634_v37 }
  0xc9   : > { %v416_v34 = vadd.f32 %v3338_v35, %v415_v31 }
  0xcb   : > { %v485_v38 = vmax.f32 %v416_v34, 0.0 }
  0xcc   : > { %v656_v45 = vld [vmem:[#allocation2 + $0x61] sm:$0xff] }
  0xcd   : > { %574 = vst.msk [vmem:[#allocation2 + $0x69] sm:$0xff] %vm510_vm1, %v485_v38  ;;  %v607_v46 = vld [vmem:[#allocation2 + $0x60] sm:$0xff]  ;;  %v759_v38 = vpop.f32.mrf.mxu1 }
  0xd0   : > { %v418_v39 = vpop.f32.mrf.mxu0 }
  0xd1   : > { %v419_v40 = vadd.f32 %v3338_v35, %v418_v39 }
  0xd3   : > { %v486_v41 = vmax.f32 %v419_v40, 0.0  ;;  %2994 = vmatmul.msk.bf16.vlgmr.msrb.gmra.mxu0 %vm510_vm1, %v632_v63 }
  0xd4   : > { %v657_v42 = vld [vmem:[#allocation2 + $0x69] sm:$0xff] }
  0xd5   : > { %575 = vst.msk [vmem:[#allocation2 + $0x79] sm:$0xff] %vm510_vm1, %v486_v41  ;;  %v608_v43 = vld [vmem:[#allocation2 + $0x68] sm:$0xff]  ;;  %v3444_v48 = vpack.c.bf16 %v657_v42, %v656_v45 }
  0xd6   : > { %v635_v49 = vpack.c.bf16 %v608_v43, %v607_v46  ;;  %v3491_v43 = vadd.f32 %v899_v33, %v759_v38 }
  0xd7   : > { %2948 = vmatmul.msk.bf16.gmra.mxu1 %vm510_vm1, %v3444_v48 }
  0xd8   : > { %v420_v44 = vpop.f32.mrf.mxu0  ;;  %2964 = vmatmul.msk.bf16.gmra.mxu2 %vm510_vm1, %v635_v49 }
  0xd9   : > { %v421_v47 = vadd.f32 %v3338_v35, %v420_v44 }
  0xdb   : > { %v487_v50 = vmax.f32 %v421_v47, 0.0  ;;  %v901_v47 = vpop.f32.mrf.mxu2 }
  0xdc   : > { %v658_v57 = vld [vmem:[#allocation2 + $0x79] sm:$0xff] }
  0xdd   : > { %576 = vst.msk [vmem:[#allocation2 + $0x81] sm:$0xff] %vm510_vm1, %v487_v50  ;;  %v609_v58 = vld [vmem:[#allocation2 + $0x78] sm:$0xff] }
  0xe0   : > { %v423_v51 = vpop.f32.mrf.mxu0 }
  0xe1   : > { %v424_v52 = vadd.f32 %v3338_v35, %v423_v51 }
  0xe3   : > { %v488_v53 = vmax.f32 %v424_v52, 0.0  ;;  %2995 = vmatmul.msk.bf16.gmra.mxu0 %vm510_vm1, %v633_v18 }
  0xe4   : > { %v659_v54 = vld [vmem:[#allocation2 + $0x81] sm:$0xff] }
  0xe5   : > { %577 = vst.msk [vmem:[#allocation2 + $0x91] sm:$0xff] %vm510_vm1, %v488_v53  ;;  %v610_v55 = vld [vmem:[#allocation2 + $0x80] sm:$0xff]  ;;  %v3454_v60 = vpack.c.bf16 %v659_v54, %v658_v57 }
  0xe6   : > { %v636_v61 = vpack.c.bf16 %v610_v55, %v609_v58 }
  0xe7   : > { %2949 = vmatmul.msk.bf16.gmra.mxu1 %vm510_vm1, %v3454_v60 }
  0xe8   : > { %v425_v56 = vpop.f32.mrf.mxu0  ;;  %2965 = vmatmul.msk.bf16.gmra.mxu2 %vm510_vm1, %v636_v61 }
  0xe9   : > { %v426_v59 = vadd.f32 %v3338_v35, %v425_v56 }
  0xeb   : > { %v489_v63 = vmax.f32 %v426_v59, 0.0 }
  0xec   : > { %v660_v6 = vld [vmem:[#allocation2 + $0x91] sm:$0xff] }
  0xed   : > { %578 = vst.msk [vmem:[#allocation2 + $0x99] sm:$0xff] %vm510_vm1, %v489_v63  ;;  %v611_v7 = vld [vmem:[#allocation2 + $0x90] sm:$0xff] }
  0xf0   : > { %v428_v0 = vpop.f32.mrf.mxu0 }
  0xf1   : > { %v429_v1 = vadd.f32 %v3338_v35, %v428_v0 }
  0xf3   : > { %v490_v2 = vmax.f32 %v429_v1, 0.0  ;;  %2996 = vmatmul.msk.bf16.gmra.mxu0 %vm510_vm1, %v634_v37 }
  0xf4   : > { %v661_v3 = vld [vmem:[#allocation2 + $0x99] sm:$0xff] }
  0xf5   : > { %579 = vst.msk [vmem:[#allocation2 + $0xa9] sm:$0xff] %vm510_vm1, %v490_v2  ;;  %v612_v4 = vld [vmem:[#allocation2 + $0x98] sm:$0xff]  ;;  %v3464_v9 = vpack.c.bf16 %v661_v3, %v660_v6  ;;  %v458_v2 = vpop.f32.mrf.mxu3 }
  0xf6   : > { %v637_v10 = vpack.c.bf16 %v612_v4, %v611_v7  ;;  %v459_v3 = vadd.f32 %v3338_v35, %v458_v2 }
  0xf7   : > { %2950 = vmatmul.msk.bf16.gmra.mxu1 %vm510_vm1, %v3464_v9 }
  0xf8   : > { %v430_v5 = vpop.f32.mrf.mxu0  ;;  %2966 = vmatmul.msk.bf16.gmra.mxu2 %vm510_vm1, %v637_v10  ;;  %v502_v7 = vmax.f32 %v459_v3, 0.0 }
  0xf9   : > { %v431_v8 = vadd.f32 %v3338_v35, %v430_v5 }
  0xfa   : > { %591 = vst.msk [vmem:[#allocation2 + $0x139] sm:$0xff] %vm510_vm1, %v502_v7 }
  0xfb   : > { %v491_v11 = vmax.f32 %v431_v8, 0.0 }
  0xfc   : > { %v662_v21 = vld [vmem:[#allocation2 + $0xa9] sm:$0xff] }
  0xfd   : > { %580 = vst.msk [vmem:[#allocation2 + $0xb1] sm:$0xff] %vm510_vm1, %v491_v11  ;;  %v613_v22 = vld [vmem:[#allocation2 + $0xa8] sm:$0xff] }
 0x100   : > { %v433_v12 = vpop.f32.mrf.mxu0 }
 0x101   : > { %v434_v13 = vadd.f32 %v3338_v35, %v433_v12  ;;  %v460_v12 = vpop.f32.mrf.mxu3 }
 0x102   : > { %v461_v15 = vadd.f32 %v3338_v35, %v460_v12 }
 0x103   : > { %v492_v14 = vmax.f32 %v434_v13, 0.0  ;;  %2997 = vmatmul.msk.bf16.gmra.mxu0 %vm510_vm1, %v635_v49  ;;  %v761_v49 = vpop.f32.mrf.mxu1 }
 0x104   : > { %v663_v18 = vld [vmem:[#allocation2 + $0xb1] sm:$0xff]  ;;  %v3503_v52 = vadd.f32 %v901_v47, %v761_v49 }
 0x105   : > { %581 = vst.msk [vmem:[#allocation2 + $0xc1] sm:$0xff] %vm510_vm1, %v492_v14  ;;  %v614_v19 = vld [vmem:[#allocation2 + $0xb0] sm:$0xff]  ;;  %v3478_v24 = vpack.c.bf16 %v663_v18, %v662_v21 }
 0x106   : > { %v638_v25 = vpack.c.bf16 %v614_v19, %v613_v22  ;;  %v503_v22 = vmax.f32 %v461_v15, 0.0 }
 0x107   : > { %2951 = vmatmul.msk.bf16.gmra.mxu1 %vm510_vm1, %v3478_v24 }
 0x108   : > { %v435_v20 = vpop.f32.mrf.mxu0  ;;  %2967 = vmatmul.msk.bf16.gmra.mxu2 %vm510_vm1, %v638_v25  ;;  %592 = vst.msk [vmem:[#allocation2 + $0x141] sm:$0xff] %vm510_vm1, %v503_v22 }
 0x109   : > { %v436_v23 = vadd.f32 %v3338_v35, %v435_v20 }
 0x10b   : > { %v493_v26 = vmax.f32 %v436_v23, 0.0  ;;  %v3027_v23 = vld [vmem:[%s4589_s3 + $0xa] sm:$0x3] }
 0x10c   : > { %v664_v40 = vld [vmem:[#allocation2 + $0xc1] sm:$0xff]  ;;  %v1744_v28 = vsel %vm746_vm2, %v3027_v23, 0 }
 0x10d   : > { %582 = vst.msk [vmem:[#allocation2 + $0xc9] sm:$0xff] %vm510_vm1, %v493_v26  ;;  %v615_v41 = vld [vmem:[#allocation2 + $0xc0] sm:$0xff]  ;;  %1753 = vmatpush.bf16.msrb.mxu2 %v1744_v28 }
 0x110   : > { %v438_v30 = vpop.f32.mrf.mxu0 }
 0x111   : > { %v439_v31 = vadd.f32 %v3338_v35, %v438_v30 }
 0x113   : > { %v494_v32 = vmax.f32 %v439_v31, 0.0  ;;  %2998 = vmatmul.msk.bf16.gmra.mxu0 %vm510_vm1, %v636_v61  ;;  %v463_v31 = vpop.f32.mrf.mxu3 }
 0x114   : > { %v665_v34 = vld [vmem:[#allocation2 + $0xc9] sm:$0xff] }
 0x115   : > { %583 = vst.msk [vmem:[#allocation2 + $0xd9] sm:$0xff] %vm510_vm1, %v494_v32  ;;  %v616_v37 = vld [vmem:[#allocation2 + $0xc8] sm:$0xff]  ;;  %v3493_v44 = vpack.c.bf16 %v665_v34, %v664_v40  ;;  %v464_v32 = vadd.f32 %v3338_v35, %v463_v31 }
 0x116   : > { %v3495_v45 = vpack.c.bf16 %v616_v37, %v615_v41  ;;  %v675_v31 = vld [vmem:[#allocation2 + $0x141] sm:$0xff] }
 0x117   : > { %2952 = vmatmul.msk.bf16.gmra.mxu1 %vm510_vm1, %v3493_v44  ;;  %v504_v38 = vmax.f32 %v464_v32, 0.0 }
 0x118   : > { %v440_v39 = vpop.f32.mrf.mxu0  ;;  %2968 = vmatmul.msk.bf16.gmra.mxu2 %vm510_vm1, %v3495_v45 }
 0x119   : > { %v441_v42 = vadd.f32 %v3338_v35, %v440_v39  ;;  %593 = vst.msk [vmem:[#allocation2 + $0x151] sm:$0xff] %vm510_vm1, %v504_v38  ;;  %v1648_v38 = vld [vmem:[#allocation2 + $0x3a] sm:$0xff] }
 0x11b   : > { %v495_v46 = vmax.f32 %v441_v42, 0.0  ;;  %v465_v42 = vpop.f32.mrf.mxu3 }
 0x11c   : > { %v666_v57 = vld [vmem:[#allocation2 + $0xd9] sm:$0xff]  ;;  %v466_v49 = vadd.f32 %v3338_v35, %v465_v42 }
 0x11d   : > { %584 = vst.msk [vmem:[#allocation2 + $0xe1] sm:$0xff] %vm510_vm1, %v495_v46  ;;  %v617_v58 = vld [vmem:[#allocation2 + $0xd8] sm:$0xff] }
 0x120   : > { %v443_v50 = vpop.f32.mrf.mxu0 }
 0x121   : > { %v444_v51 = vadd.f32 %v3338_v35, %v443_v50 }
 0x123   : > { %v496_v53 = vmax.f32 %v444_v51, 0.0  ;;  %2999 = vmatmul.msk.bf16.gmra.mxu0 %vm510_vm1, %v637_v10 }
 0x124   : > { %v667_v54 = vld [vmem:[#allocation2 + $0xe1] sm:$0xff]  ;;  %v764_v0 = vpop.f32.mrf.mxu1 }
 0x125   : > { %585 = vst.msk [vmem:[#allocation2 + $0xf1] sm:$0xff] %vm510_vm1, %v496_v53  ;;  %v618_v55 = vld [vmem:[#allocation2 + $0xe0] sm:$0xff]  ;;  %v3508_v61 = vpack.c.bf16 %v667_v54, %v666_v57 }
 0x126   : > { %v3510_v63 = vpack.c.bf16 %v618_v55, %v617_v58 }
 0x127   : > { %2953 = vmatmul.msk.bf16.gmra.mxu1 %vm510_vm1, %v3508_v61 }
 0x128   : > { %v445_v56 = vpop.f32.mrf.mxu0  ;;  %2969 = vmatmul.msk.bf16.gmra.mxu2 %vm510_vm1, %v3510_v63 }
 0x129   : > { %v446_v59 = vadd.f32 %v3338_v35, %v445_v56  ;;  %v505_v56 = vmax.f32 %v466_v49, 0.0  ;;  %v676_v49 = vld [vmem:[#allocation2 + $0x151] sm:$0xff] }
 0x12b   : > { %v497_v1 = vmax.f32 %v446_v59, 0.0  ;;  %v904_v5 = vpop.f32.mrf.mxu2  ;;  %594 = vst.msk [vmem:[#allocation2 + $0x159] sm:$0xff] %vm510_vm1, %v505_v56  ;;  %v1649_v56 = vld [vmem:[#allocation2 + $0x4a] sm:$0xff] }
 0x12c   : > { %v3519_v8 = vadd.f32 %v904_v5, %v764_v0  ;;  %v766_v10 = vpop.f32.mrf.mxu1  ;;  %v668_v19 = vld [vmem:[#allocation2 + $0xf1] sm:$0xff] }
 0x12d   : > { %586 = vst.msk [vmem:[#allocation2 + $0xf9] sm:$0xff] %vm510_vm1, %v497_v1  ;;  %v619_v20 = vld [vmem:[#allocation2 + $0xf0] sm:$0xff]  ;;  %v468_v1 = vpop.f32.mrf.mxu3 }
 0x12e   : > { %v469_v2 = vadd.f32 %v3338_v35, %v468_v1 }
 0x130   : > { %v448_v4 = vpop.f32.mrf.mxu0  ;;  %v506_v5 = vmax.f32 %v469_v2, 0.0  ;;  %v2976_v2 = vld [vmem:[%s4589_s3 + $0x4] sm:$0x3] }
 0x131   : > { %v449_v6 = vadd.f32 %v3338_v35, %v448_v4 }
 0x132   : > { %595 = vst.msk [vmem:[#allocation2 + $0x169] sm:$0xff] %vm510_vm1, %v506_v5 }
 0x133   : > { %v498_v11 = vmax.f32 %v449_v6, 0.0  ;;  %3000 = vmatmul.msk.bf16.gmra.mxu0 %vm510_vm1, %v638_v25  ;;  %v906_v18 = vpop.f32.mrf.mxu2 }
 0x134   : > { %v669_v13 = vld [vmem:[#allocation2 + $0xf9] sm:$0xff]  ;;  %v3529_v25 = vadd.f32 %v906_v18, %v766_v10  ;;  %v769_v29 = vpop.f32.mrf.mxu1 }
 0x135   : > { %587 = vst.msk [vmem:[#allocation2 + $0x109] sm:$0xff] %vm510_vm1, %v498_v11  ;;  %v620_v14 = vld [vmem:[#allocation2 + $0xf8] sm:$0xff]  ;;  %v3531_v26 = vpack.c.bf16 %v669_v13, %v668_v19  ;;  %v470_v13 = vpop.f32.mrf.mxu3  ;;  %v1646_v19 = vld [vmem:[#allocation2 + $0x22] sm:$0xff] }
 0x136   : > { %v3533_v27 = vpack.c.bf16 %v620_v14, %v619_v20  ;;  %v471_v14 = vadd.f32 %v3338_v35, %v470_v13  ;;  %v1645_v18 = vld [vmem:[#allocation2 + $0x1a] sm:$0xff] }
 0x137   : > { %2954 = vmatmul.msk.bf16.gmra.mxu1 %vm510_vm1, %v3531_v26  ;;  %v3579_v22 = vpack.c.bf16 %v1646_v19, %v1645_v18 }
 0x138   : > { %v450_v16 = vpop.f32.mrf.mxu0  ;;  %2970 = vmatmul.msk.bf16.gmra.mxu2 %vm510_vm1, %v3533_v27  ;;  %v507_v20 = vmax.f32 %v471_v14, 0.0 }
 0x139   : > { %v451_v21 = vadd.f32 %v3338_v35, %v450_v16 }
 0x13a   : > { %596 = vst.msk [vmem:[#allocation2 + $0x171] sm:$0xff] %vm510_vm1, %v507_v20 }
 0x13b   : > { %v499_v30 = vmax.f32 %v451_v21, 0.0  ;;  %v909_v34 = vpop.f32.mrf.mxu2 }
 0x13c   : > { %v3544_v39 = vadd.f32 %v909_v34, %v769_v29  ;;  %v771_v40 = vpop.f32.mrf.mxu1  ;;  %v670_v53 = vld [vmem:[#allocation2 + $0x109] sm:$0xff] }
 0x13d   : > { %588 = vst.msk [vmem:[#allocation2 + $0x111] sm:$0xff] %vm510_vm1, %v499_v30  ;;  %v621_v54 = vld [vmem:[#allocation2 + $0x108] sm:$0xff]  ;;  %v674_v30 = vld [vmem:[#allocation2 + $0x139] sm:$0xff] }
 0x140   : > { %v453_v33 = vpop.f32.mrf.mxu0 }
 0x141   : > { %v454_v37 = vadd.f32 %v3338_v35, %v453_v33  ;;  %v3591_v33 = vpack.c.bf16 %v675_v31, %v674_v30  ;;  %v679_v18 = vld [vmem:[#allocation2 + $0x171] sm:$0xff]  ;;  %v1651_v30 = vld [vmem:[#allocation2 + $0x62] sm:$0xff] }
 0x142   : > { %v1652_v31 = vld [vmem:[#allocation2 + $0x6a] sm:$0xff] }
 0x143   : > { %v500_v41 = vmax.f32 %v454_v37, 0.0  ;;  %3001 = vmatmul.msk.bf16.gmra.mxu0 %vm510_vm1, %v3495_v45  ;;  %v911_v51 = vpop.f32.mrf.mxu2  ;;  %v1647_v37 = vld [vmem:[#allocation2 + $0x32] sm:$0xff] }
 0x144   : > { %v671_v46 = vld [vmem:[#allocation2 + $0x111] sm:$0xff]  ;;  %v3552_v57 = vadd.f32 %v911_v51, %v771_v40  ;;  %v774_v59 = vpop.f32.mrf.mxu1  ;;  %v3599_v42 = vpack.c.bf16 %v1648_v38, %v1647_v37  ;;  %v3641_v37 = vpack.c.bf16 %v1652_v31, %v1651_v30 }
 0x145   : > { %589 = vst.msk [vmem:[#allocation2 + $0x121] sm:$0xff] %vm510_vm1, %v500_v41  ;;  %v622_v47 = vld [vmem:[#allocation2 + $0x110] sm:$0xff]  ;;  %v3554_v58 = vpack.c.bf16 %v671_v46, %v670_v53  ;;  %v1225_v38 = vld [vmem:[#allocation2 + $0x138] sm:$0xff] }
 0x146   : > { %v642_v45 = vpack.c.bf16 %v622_v47, %v621_v54  ;;  %v1228_v30 = vld [vmem:[#allocation2 + $0x158] sm:$0xff] }
 0x147   : > { %2955 = vmatmul.msk.bf16.gmra.mxu1 %vm510_vm1, %v3554_v58 }
 0x148   : > { %v455_v50 = vpop.f32.mrf.mxu0  ;;  %2971 = vmatmul.msk.bf16.gmra.mxu2 %vm510_vm1, %v642_v45 }
 0x149   : > { %v456_v55 = vadd.f32 %v3338_v35, %v455_v50  ;;  %v677_v50 = vld [vmem:[#allocation2 + $0x159] sm:$0xff] }
 0x14a   : > { %v3610_v53 = vpack.c.bf16 %v677_v50, %v676_v49 }
 0x14b   : > { %v501_v0 = vmax.f32 %v456_v55, 0.0  ;;  %v914_v4 = vpop.f32.mrf.mxu2 }
 0x14c   : > { %v3564_v6 = vadd.f32 %v914_v4, %v774_v59  ;;  %v776_v7 = vpop.f32.mrf.mxu1  ;;  %v672_v10 = vld [vmem:[#allocation2 + $0x121] sm:$0xff]  ;;  %v1650_v59 = vld [vmem:[#allocation2 + $0x52] sm:$0xff] }
 0x14d   : > { %590 = vst.msk [vmem:[#allocation2 + $0x129] sm:$0xff] %vm510_vm1, %v501_v0  ;;  %v3621_v4 = vpack.c.bf16 %v1650_v59, %v1649_v56  ;;  %v473_v56 = vpop.f32.mrf.mxu3 }
 0x14e   : > { %v474_v59 = vadd.f32 %v3338_v35, %v473_v56  ;;  %v1655_v56 = vld [vmem:[#allocation2 + $0x92] sm:$0xff] }
 0x150   : > { %v3562_v3 = vpop.f32.mrf.mxu0 }
 0x151   : > { %4594 = vst [vmem:[#allocation3_spill] sm:$0xff] %v3562_v3 }
 0x153   : > { %3002 = vmatmul.msk.bf16.gmra.mxu0 %vm510_vm1, %v3510_v63  ;;  %v916_v16 = vpop.f32.mrf.mxu2 }
 0x154   : > { %v673_v11 = vld [vmem:[#allocation2 + $0x129] sm:$0xff]  ;;  %v3576_v21 = vadd.f32 %v916_v16, %v776_v7  ;;  %v779_v63 = vpop.f32.mrf.mxu1 }
 0x155   : > { %v3569_v12 = vpack.c.bf16 %v673_v11, %v672_v10  ;;  %v1224_v5 = vld [vmem:[#allocation2 + $0x128] sm:$0xff]  ;;  %v1223_v10 = vld [vmem:[#allocation2 + $0x120] sm:$0xff] }
 0x156   : > { %v1244_v13 = vpack.c.bf16 %v1224_v5, %v1223_v10  ;;  %v678_v16 = vld [vmem:[#allocation2 + $0x169] sm:$0xff] }
 0x157   : > { %2956 = vmatmul.msk.bf16.vlgmr.msrb.gmra.mxu3 %vm510_vm1, %v3569_v12  ;;  %3011 = vmatmul.msk.bf16.vlgmr.msrb.gmra.mxu1 %vm510_vm1, %v3400_v62  ;;  %v3633_v20 = vpack.c.bf16 %v679_v18, %v678_v16  ;;  %v1654_v5 = vld [vmem:[#allocation2 + $0x82] sm:$0xff]  ;;  %v475_v18 = vpop.f32.mrf.mxu3 }
 0x158   : > { %v3574_v15 = vpop.f32.mrf.mxu0  ;;  %3028 = vmatmul.msk.bf16.vlgmr.msrb.gmra.mxu2 %vm510_vm1, %v3579_v22 }
 0x159   : > { %4595 = vst [vmem:[#allocation4_spill] sm:$0xff] %v3574_v15 }
 0x15b   : > { %v919_v28 = vpop.f32.mrf.mxu2 }
 0x15c   : > { %v3587_v29 = vadd.f32 %v919_v28, %v779_v63  ;;  %v781_v32 = vpop.f32.mrf.mxu1 }
 0x160   : > { %v3585_v23 = vpop.f32.mrf.mxu0 }
 0x161   : > { %4596 = vst [vmem:[#allocation5_spill] sm:$0xff] %v3585_v23 }
 0x163   : > { %3003 = vmatmul.msk.bf16.gmra.mxu0 %vm510_vm1, %v3533_v27  ;;  %v921_v34 = vpop.f32.mrf.mxu2 }
 0x164   : > { %v3597_v40 = vadd.f32 %v921_v34, %v781_v32  ;;  %v784_v41 = vpop.f32.mrf.mxu1 }
 0x167   : > { %2957 = vmatmul.msk.bf16.gmra.mxu3 %vm510_vm1, %v3591_v33  ;;  %3012 = vmatmul.msk.bf16.gmra.mxu1 %vm510_vm1, %v3419_v17 }
 0x168   : > { %v3595_v62 = vpop.f32.mrf.mxu0  ;;  %3029 = vmatmul.msk.bf16.gmra.mxu2 %vm510_vm1, %v3599_v42 }
 0x169   : > { %4597 = vst [vmem:[#allocation6_spill] sm:$0xff] %v3595_v62 }
 0x16b   : > { %v924_v46 = vpop.f32.mrf.mxu2 }
 0x16c   : > { %v3607_v47 = vadd.f32 %v924_v46, %v784_v41  ;;  %v786_v51 = vpop.f32.mrf.mxu1  ;;  %v1226_v41 = vld [vmem:[#allocation2 + $0x140] sm:$0xff] }
 0x16d   : > { %v1245_v50 = vpack.c.bf16 %v1226_v41, %v1225_v38 }
 0x170   : > { %v3605_v27 = vpop.f32.mrf.mxu0 }
 0x171   : > { %4598 = vst [vmem:[#allocation7_spill] sm:$0xff] %v3605_v27 }
 0x173   : > { %3004 = vmatmul.msk.bf16.gmra.mxu0 %vm510_vm1, %v642_v45  ;;  %v926_v55 = vpop.f32.mrf.mxu2  ;;  %v1078_v45 = vsel %vm746_vm2, %v2976_v2, 0 }
 0x174   : > { %v3616_v0 = vadd.f32 %v926_v55, %v786_v51  ;;  %v789_v1 = vpop.f32.mrf.mxu1  ;;  %1087 = vmatpush.bf16.msrb.mxu3 %v1078_v45  ;;  %v1653_v45 = vld [vmem:[#allocation2 + $0x7a] sm:$0xff] }
 0x177   : > { %2958 = vmatmul.msk.bf16.gmra.mxu3 %vm510_vm1, %v3610_v53  ;;  %3013 = vmatmul.msk.bf16.gmra.mxu1 %vm510_vm1, %v3434_v36 }
 0x178   : > { %v3614_v54 = vpop.f32.mrf.mxu0  ;;  %3030 = vmatmul.msk.bf16.gmra.mxu2 %vm510_vm1, %v3621_v4 }
 0x179   : > { %4599 = vst [vmem:[#allocation8_spill] sm:$0xff] %v3614_v54 }
 0x17b   : > { %v929_v11 = vpop.f32.mrf.mxu2 }
 0x17c   : > { %v3630_v14 = vadd.f32 %v929_v11, %v789_v1  ;;  %v791_v19 = vpop.f32.mrf.mxu1  ;;  %v508_v1 = vmax.f32 %v474_v59, 0.0  ;;  %v1656_v59 = vld [vmem:[#allocation2 + $0x9a] sm:$0xff] }
 0x17e   : > { %597 = vst.msk [vmem:[#allocation2 + $0x181] sm:$0xff] %vm510_vm1, %v508_v1 }
 0x180   : > { %v3628_v7 = vpop.f32.mrf.mxu0 }
 0x181   : > { %4600 = vst [vmem:[#allocation9_spill] sm:$0xff] %v3628_v7 }
 0x183   : > { %3005 = vmatmul.msk.bf16.gmra.mxu0 %vm510_vm1, %v1244_v13  ;;  %v931_v28 = vpop.f32.mrf.mxu2 }
 0x184   : > { %v3639_v32 = vadd.f32 %v931_v28, %v791_v19  ;;  %v794_v34 = vpop.f32.mrf.mxu1  ;;  %v3659_v19 = vpack.c.bf16 %v1654_v5, %v1653_v45  ;;  %v476_v28 = vadd.f32 %v3338_v35, %v475_v18  ;;  %v3675_v45 = vpack.c.bf16 %v1656_v59, %v1655_v56  ;;  %v1229_v5 = vld [vmem:[#allocation2 + $0x168] sm:$0xff]  ;;  %v1658_v59 = vld [vmem:[#allocation2 + $0xb2] sm:$0xff] }
 0x185   : > { %v1657_v56 = vld [vmem:[#allocation2 + $0xaa] sm:$0xff] }
 0x186   : > { %v509_v31 = vmax.f32 %v476_v28, 0.0 }
 0x187   : > { %2959 = vmatmul.msk.bf16.gmra.mxu3 %vm510_vm1, %v3633_v20  ;;  %3014 = vmatmul.msk.bf16.gmra.mxu1 %vm510_vm1, %v3444_v48 }
 0x188   : > { %v3637_v63 = vpop.f32.mrf.mxu0  ;;  %3031 = vmatmul.msk.bf16.gmra.mxu2 %vm510_vm1, %v3641_v37  ;;  %598 = vst.msk [vmem:[#allocation2 + $0x189] sm:$0xff] %vm510_vm1, %v509_v31  ;;  %v3061_v31 = vld [vmem:[%s4589_s3 + $0xe] sm:$0x3] }
 0x189   : > { %4601 = vst [vmem:[#allocation10_spill] sm:$0xff] %v3637_v63 }
 0x18b   : > { %v934_v49 = vpop.f32.mrf.mxu2 }
 0x18c   : > { %v3649_v51 = vadd.f32 %v934_v49, %v794_v34  ;;  %v796_v55 = vpop.f32.mrf.mxu1 }
 0x190   : > { %v3647_v46 = vpop.f32.mrf.mxu0 }
 0x191   : > { %4602 = vst [vmem:[#allocation11_spill] sm:$0xff] %v3647_v46 }
 0x193   : > { %3006 = vmatmul.msk.bf16.gmra.mxu0 %vm510_vm1, %v1245_v50  ;;  %v936_v2 = vpop.f32.mrf.mxu2 }
 0x194   : > { %v3655_v10 = vadd.f32 %v936_v2, %v796_v55  ;;  %v799_v16 = vpop.f32.mrf.mxu1 }
 0x197   : > { %2972 = vmatmul.msk.bf16.vlgmr.msra.gmra.mxu3 %vm510_vm1, %v1244_v13  ;;  %3015 = vmatmul.msk.bf16.gmra.mxu1 %vm510_vm1, %v3454_v60  ;;  %v1227_v13 = vld [vmem:[#allocation2 + $0x150] sm:$0xff] }
 0x198   : > { %v3657_v11 = vpop.f32.mrf.mxu0  ;;  %3032 = vmatmul.msk.bf16.gmra.mxu2 %vm510_vm1, %v3659_v19  ;;  %v1246_v38 = vpack.c.bf16 %v1228_v30, %v1227_v13 }
 0x199   : > { %4603 = vst [vmem:[#allocation12_spill] sm:$0xff] %v3657_v11 }
 0x19b   : > { %v939_v34 = vpop.f32.mrf.mxu2 }
 0x19c   : > { %v3667_v41 = vadd.f32 %v939_v34, %v799_v16  ;;  %v801_v49 = vpop.f32.mrf.mxu1  ;;  %v1230_v16 = vld [vmem:[#allocation2 + $0x170] sm:$0xff]  ;;  %v2189_v34 = vsel %vm746_vm2, %v3061_v31, 0 }
 0x19d   : > { %2198 = vmatpush.bf16.msra.mxu0 %v2189_v34 }
 0x1a0   : > { %v3670_v55 = vpop.f32.mrf.mxu0 }
 0x1a1   : > { %4604 = vst [vmem:[#allocation13_spill] sm:$0xff] %v3670_v55 }
 0x1a3   : > { %3007 = vmatmul.msk.bf16.gmra.mxu0 %vm510_vm1, %v1246_v38  ;;  %v941_v35 = vpop.f32.mrf.mxu2 }
 0x1a4   : > { %v3673_v1 = vadd.f32 %v941_v35, %v801_v49  ;;  %v804_v2 = vpop.f32.mrf.mxu1 }
 0x1a7   : > { %2973 = vmatmul.msk.bf16.gmra.mxu3 %vm510_vm1, %v1245_v50  ;;  %3016 = vmatmul.msk.bf16.gmra.mxu1 %vm510_vm1, %v3464_v9  ;;  %v1247_v50 = vpack.c.bf16 %v1230_v16, %v1229_v5  ;;  %v3695_v16 = vpack.c.bf16 %v1658_v59, %v1657_v56 }
 0x1a8   : > { %3033 = vmatmul.msk.bf16.gmra.mxu2 %vm510_vm1, %v3675_v45  ;;  %v3681_v18 = vpop.f32.mrf.mxu0 }
 0x1a9   : > { %4605 = vst [vmem:[#allocation14_spill] sm:$0xff] %v3681_v18  ;;  %v1232_v18 = vld [vmem:[#allocation2 + $0x188] sm:$0xff] }
 0x1ab   : > { %v944_v28 = vpop.f32.mrf.mxu2 }
 0x1ac   : > { %v3683_v13 = vadd.f32 %v944_v28, %v804_v2  ;;  %v806_v30 = vpop.f32.mrf.mxu1  ;;  %v1231_v28 = vld [vmem:[#allocation2 + $0x180] sm:$0xff] }
 0x1ad   : > { %v1248_v31 = vpack.c.bf16 %v1232_v18, %v1231_v28  ;;  %v1659_v28 = vld [vmem:[#allocation2 + $0xc2] sm:$0xff] }
 0x1b0   : > { %v3691_v49 = vpop.f32.mrf.mxu0 }
 0x1b1   : > { %4606 = vst [vmem:[#allocation15_spill] sm:$0xff] %v3691_v49  ;;  %v3078_v49 = vld [vmem:[%s4589_s3 + $0x10] sm:$0x3] }
 0x1b2   : > { %v2411_v55 = vsel %vm746_vm2, %v3078_v49, 0  ;;  %v979_v49 = vld [vmem:[#allocation2 + $0x2] sm:$0xff] }
 0x1b3   : > { %3008 = vmatmul.msk.bf16.gmra.mxu0 %vm510_vm1, %v1247_v50  ;;  %v946_v35 = vpop.f32.mrf.mxu2  ;;  %2420 = vmatpush.bf16.msra.mxu1 %v2411_v55  ;;  %v980_v55 = vld [vmem:[#allocation2 + $0xa] sm:$0xff] }
 0x1b4   : > { %v3693_v5 = vadd.f32 %v946_v35, %v806_v30  ;;  %v809_v2 = vpop.f32.mrf.mxu1 }
 0x1b7   : > { %2974 = vmatmul.msk.bf16.gmra.mxu3 %vm510_vm1, %v1246_v38  ;;  %3017 = vmatmul.msk.bf16.gmra.mxu1 %vm510_vm1, %v3478_v24  ;;  %v3044_v38 = vld [vmem:[%s4589_s3 + $0xc] sm:$0x3] }
 0x1b8   : > { %3034 = vmatmul.msk.bf16.gmra.mxu2 %vm510_vm1, %v3695_v16  ;;  %v1967_v34 = vsel %vm746_vm2, %v3044_v38, 0  ;;  %v3707_v56 = vpop.f32.mrf.mxu0  ;;  %v1660_v38 = vld [vmem:[#allocation2 + $0xca] sm:$0xff] }
 0x1b9   : > { %1976 = vmatpush.bf16.msra.mxu3 %v1967_v34  ;;  %4607 = vst [vmem:[#allocation16_spill] sm:$0xff] %v3707_v56 }
 0x1bb   : > { %v949_v30 = vpop.f32.mrf.mxu2 }
 0x1bc   : > { %v3705_v35 = vadd.f32 %v949_v30, %v809_v2  ;;  %v811_v59 = vpop.f32.mrf.mxu1  ;;  %v3717_v30 = vpack.c.bf16 %v1660_v38, %v1659_v28  ;;  %v1661_v38 = vld [vmem:[#allocation2 + $0xda] sm:$0xff] }
 0x1c0   : > { %v3719_v56 = vpop.f32.mrf.mxu0 }
 0x1c1   : > { %4608 = vst [vmem:[#allocation17_spill] sm:$0xff] %v3719_v56  ;;  %v1662_v56 = vld [vmem:[#allocation2 + $0xe2] sm:$0xff] }
 0x1c2   : > { %v3736_v54 = vpack.c.bf16 %v1662_v56, %v1661_v38  ;;  %v1664_v56 = vld [vmem:[#allocation2 + $0xfa] sm:$0xff] }
 0x1c3   : > { %3009 = vmatmul.msk.bf16.gmra.mxu0 %vm510_vm1, %v1248_v31  ;;  %v951_v18 = vpop.f32.mrf.mxu2 }
 0x1c4   : > { %v3715_v34 = vadd.f32 %v951_v18, %v811_v59  ;;  %v814_v2 = vpop.f32.mrf.mxu1  ;;  %v1011_v59 = vpack.c.bf16 %v980_v55, %v979_v49 }
 0x1c7   : > { %2975 = vmatmul.msk.bf16.gmra.mxu3 %vm510_vm1, %v1247_v50  ;;  %3018 = vmatmul.msk.bf16.gmra.mxu1 %vm510_vm1, %v3493_v44 }
 0x1c8   : > { %3035 = vmatmul.msk.bf16.gmra.mxu2 %vm510_vm1, %v3717_v30  ;;  %v3729_v18 = vpop.f32.mrf.mxu0 }
 0x1c9   : > { %4609 = vst [vmem:[#allocation18_spill] sm:$0xff] %v3729_v18 }
 0x1cb   : > { %v954_v31 = vpop.f32.mrf.mxu2 }
 0x1cc   : > { %v3725_v50 = vadd.f32 %v954_v31, %v814_v2  ;;  %v816_v11 = vpop.f32.mrf.mxu1 }
 0x1d3   : > { %3062 = vmatmul.msk.bf16.vlgmr.msra.gmra.mxu0 %vm510_vm1, %v3419_v17  ;;  %v956_v28 = vpop.f32.mrf.mxu2  ;;  %v3742_v17 = vpop.f32.mrf.mxu0 }
 0x1d4   : > { %v3732_v46 = vadd.f32 %v956_v28, %v816_v11  ;;  %v3734_v7 = vpop.f32.mrf.mxu1  ;;  %4611 = vst [vmem:[#allocation20_spill] sm:$0xff] %v3742_v17  ;;  %v1663_v11 = vld [vmem:[#allocation2 + $0xf2] sm:$0xff] }
 0x1d5   : > { %4610 = vst [vmem:[#allocation19_spill] sm:$0xff] %v3734_v7  ;;  %v3754_v28 = vpack.c.bf16 %v1664_v56, %v1663_v11  ;;  %v1666_v11 = vld [vmem:[#allocation2 + $0x112] sm:$0xff] }
 0x1d7   : > { %2977 = vmatmul.msk.bf16.vlgmr.msrb.gmra.mxu3 %vm510_vm1, %v1011_v59  ;;  %3019 = vmatmul.msk.bf16.gmra.mxu1 %vm510_vm1, %v3508_v61 }
 0x1d8   : > { %3036 = vmatmul.msk.bf16.gmra.mxu2 %vm510_vm1, %v3736_v54 }
 0x1da   : > { %v819_v63 = vpop.f32.mrf.mxu3 }
 0x1db   : > { %v3750_v31 = vpop.f32.mrf.mxu0 }
 0x1dc   : > { %v3744_v49 = vpop.f32.mrf.mxu1  ;;  %4613 = vst [vmem:[#allocation22_spill] sm:$0xff] %v3750_v31  ;;  %v1665_v31 = vld [vmem:[#allocation2 + $0x10a] sm:$0xff] }
 0x1dd   : > { %4612 = vst [vmem:[#allocation21_spill] sm:$0xff] %v3744_v49  ;;  %v3770_v18 = vpack.c.bf16 %v1666_v11, %v1665_v31  ;;  %v1667_v11 = vld [vmem:[#allocation2 + $0x122] sm:$0xff] }
 0x1e2   : > { %v821_v2 = vpop.f32.mrf.mxu3 }
 0x1e3   : > { %3063 = vmatmul.msk.bf16.gmra.mxu0 %vm510_vm1, %v3434_v36 }
 0x1e4   : > { %v3752_v59 = vpop.f32.mrf.mxu1 }
 0x1e5   : > { %4614 = vst [vmem:[#allocation23_spill] sm:$0xff] %v3752_v59 }
 0x1e7   : > { %2978 = vmatmul.msk.bf16.gmra.mxu3 %vm510_vm1, %v3579_v22  ;;  %3020 = vmatmul.msk.bf16.gmra.mxu1 %vm510_vm1, %v3531_v26  ;;  %v3764_v22 = vpop.f32.mrf.mxu0 }
 0x1e8   : > { %3037 = vmatmul.msk.bf16.gmra.mxu2 %vm510_vm1, %v3754_v28  ;;  %4616 = vst [vmem:[#allocation25_spill] sm:$0xff] %v3764_v22 }
 0x1ea   : > { %v824_v55 = vpop.f32.mrf.mxu3 }
 0x1ec   : > { %v3760_v36 = vpop.f32.mrf.mxu1 }
 0x1ed   : > { %4615 = vst [vmem:[#allocation24_spill] sm:$0xff] %v3760_v36  ;;  %v3782_v36 = vpop.f32.mrf.mxu2 }
 0x1ee   : > { %4620 = vst [vmem:[#allocation29_spill] sm:$0xff] %v3782_v36 }
 0x1ef   : > { %v3776_v27 = vpop.f32.mrf.mxu0 }
 0x1f0   : > { %4618 = vst [vmem:[#allocation27_spill] sm:$0xff] %v3776_v27 }
 0x1f2   : > { %v826_v38 = vpop.f32.mrf.mxu3 }
 0x1f3   : > { %3064 = vmatmul.msk.bf16.gmra.mxu0 %vm510_vm1, %v3444_v48 }
 0x1f4   : > { %v3768_v17 = vpop.f32.mrf.mxu1 }
 0x1f5   : > { %4617 = vst [vmem:[#allocation26_spill] sm:$0xff] %v3768_v17  ;;  %v1668_v17 = vld [vmem:[#allocation2 + $0x12a] sm:$0xff] }
 0x1f6   : > { %v3792_v27 = vpack.c.bf16 %v1668_v17, %v1667_v11  ;;  %v1669_v17 = vld [vmem:[#allocation2 + $0x13a] sm:$0xff]  ;;  %v1670_v11 = vld [vmem:[#allocation2 + $0x142] sm:$0xff] }
 0x1f7   : > { %2979 = vmatmul.msk.bf16.gmra.mxu3 %vm510_vm1, %v3599_v42  ;;  %3021 = vmatmul.msk.bf16.gmra.mxu1 %vm510_vm1, %v3554_v58  ;;  %v3786_v31 = vpop.f32.mrf.mxu0  ;;  %v3816_v15 = vpack.c.bf16 %v1670_v11, %v1669_v17  ;;  %v1671_v11 = vld [vmem:[#allocation2 + $0x152] sm:$0xff] }
 0x1f8   : > { %3038 = vmatmul.msk.bf16.gmra.mxu2 %vm510_vm1, %v3770_v18  ;;  %4621 = vst [vmem:[#allocation30_spill] sm:$0xff] %v3786_v31 }
 0x1fa   : > { %v829_v56 = vpop.f32.mrf.mxu3 }
 0x1fc   : > { %v3778_v22 = vpop.f32.mrf.mxu1 }
 0x1fd   : > { %4619 = vst [vmem:[#allocation28_spill] sm:$0xff] %v3778_v22 }
 0x1ff   : > { %v3802_v23 = vpop.f32.mrf.mxu0 }
 0x200   : > { %4624 = vst [vmem:[#allocation33_spill] sm:$0xff] %v3802_v23 }
 0x202   : > { %v831_v48 = vpop.f32.mrf.mxu3 }
 0x203   : > { %3065 = vmatmul.msk.bf16.gmra.mxu0 %vm510_vm1, %v3454_v60  ;;  %v3798_v60 = vpop.f32.mrf.mxu2 }
 0x204   : > { %v3790_v59 = vpop.f32.mrf.mxu1  ;;  %4623 = vst [vmem:[#allocation32_spill] sm:$0xff] %v3798_v60 }
 0x205   : > { %4622 = vst [vmem:[#allocation31_spill] sm:$0xff] %v3790_v59 }
 0x207   : > { %2980 = vmatmul.msk.bf16.gmra.mxu3 %vm510_vm1, %v3621_v4  ;;  %3022 = vmatmul.msk.bf16.gmra.mxu1 %vm510_vm1, %v3569_v12  ;;  %v3818_v23 = vpop.f32.mrf.mxu0 }
 0x208   : > { %3039 = vmatmul.msk.bf16.gmra.mxu2 %vm510_vm1, %v3792_v27  ;;  %4628 = vst [vmem:[#allocation37_spill] sm:$0xff] %v3818_v23  ;;  %v1672_v23 = vld [vmem:[#allocation2 + $0x15a] sm:$0xff] }
 0x209   : > { %v3838_v7 = vpack.c.bf16 %v1672_v23, %v1671_v11 }
 0x20a   : > { %v3788_v62 = vpop.f32.mrf.mxu3 }
 0x20b   : > { %v3810_v49 = vpop.f32.mrf.mxu2 }
 0x20c   : > { %v3804_v31 = vpop.f32.mrf.mxu1  ;;  %4626 = vst [vmem:[#allocation35_spill] sm:$0xff] %v3810_v49 }
 0x20d   : > { %4625 = vst [vmem:[#allocation34_spill] sm:$0xff] %v3804_v31 }
 0x20f   : > { %v3832_v17 = vpop.f32.mrf.mxu0 }
 0x210   : > { %4631 = vst [vmem:[#allocation40_spill] sm:$0xff] %v3832_v17 }
 0x212   : > { %v3800_v22 = vpop.f32.mrf.mxu3 }
 0x213   : > { %3066 = vmatmul.msk.bf16.gmra.mxu0 %vm510_vm1, %v3464_v9 }
 0x214   : > { %v3814_v60 = vpop.f32.mrf.mxu1 }
 0x215   : > { %4627 = vst [vmem:[#allocation36_spill] sm:$0xff] %v3814_v60 }
 0x217   : > { %2981 = vmatmul.msk.bf16.gmra.mxu3 %vm510_vm1, %v3641_v37  ;;  %3023 = vmatmul.msk.bf16.gmra.mxu1 %vm510_vm1, %v3591_v33 }
 0x218   : > { %3040 = vmatmul.msk.bf16.gmra.mxu2 %vm510_vm1, %v3816_v15 }
 0x21a   : > { %v959_v59 = vpop.f32.mrf.mxu3 }
 0x21b   : > { %v3812_v36 = vadd.f32 %v959_v59, %v819_v63  ;;  %v3828_v63 = vpop.f32.mrf.mxu2 }
 0x21c   : > { %4629 = vst [vmem:[#allocation38_spill] sm:$0xff] %v3828_v63  ;;  %v3830_v59 = vpop.f32.mrf.mxu1 }
 0x21d   : > { %4630 = vst [vmem:[#allocation39_spill] sm:$0xff] %v3830_v59 }
 0x222   : > { %v961_v9 = vpop.f32.mrf.mxu3 }
 0x223   : > { %v3824_v31 = vadd.f32 %v961_v9, %v821_v2  ;;  %3067 = vmatmul.msk.bf16.gmra.mxu0 %vm510_vm1, %v3478_v24  ;;  %v3844_v24 = vpop.f32.mrf.mxu2  ;;  %v3848_v9 = vpop.f32.mrf.mxu0 }
 0x224   : > { %4632 = vst [vmem:[#allocation41_spill] sm:$0xff] %v3844_v24  ;;  %v3846_v2 = vpop.f32.mrf.mxu1 }
 0x225   : > { %4633 = vst [vmem:[#allocation42_spill] sm:$0xff] %v3846_v2 }
 0x226   : > { %4634 = vst [vmem:[#allocation43_spill] sm:$0xff] %v3848_v9 }
 0x227   : > { %2982 = vmatmul.msk.bf16.gmra.mxu3 %vm510_vm1, %v3659_v19  ;;  %3024 = vmatmul.msk.bf16.gmra.mxu1 %vm510_vm1, %v3610_v53 }
 0x228   : > { %3041 = vmatmul.msk.bf16.gmra.mxu2 %vm510_vm1, %v3838_v7 }
 0x22a   : > { %v964_v60 = vpop.f32.mrf.mxu3 }
 0x22b   : > { %v3836_v49 = vadd.f32 %v964_v60, %v824_v55  ;;  %v3856_v23 = vpop.f32.mrf.mxu2  ;;  %v1673_v55 = vld [vmem:[#allocation2 + $0x16a] sm:$0xff]  ;;  %v1674_v60 = vld [vmem:[#allocation2 + $0x172] sm:$0xff]  ;;  %v3860_v63 = vpop.f32.mrf.mxu0 }
 0x22c   : > { %4635 = vst [vmem:[#allocation44_spill] sm:$0xff] %v3856_v23  ;;  %v3858_v11 = vpop.f32.mrf.mxu1  ;;  %v3864_v9 = vpack.c.bf16 %v1674_v60, %v1673_v55  ;;  %v1454_v55 = vld [vmem:[#allocation2 + $0x189] sm:$0xff] }
 0x22d   : > { %4636 = vst [vmem:[#allocation45_spill] sm:$0xff] %v3858_v11  ;;  %v1675_v60 = vld [vmem:[#allocation2 + $0x182] sm:$0xff] }
 0x22e   : > { %4637 = vst [vmem:[#allocation46_spill] sm:$0xff] %v3860_v63  ;;  %v1676_v63 = vld [vmem:[#allocation2 + $0x18a] sm:$0xff] }
 0x232   : > { %v966_v17 = vpop.f32.mrf.mxu3 }
 0x233   : > { %v3850_v59 = vadd.f32 %v966_v17, %v826_v38  ;;  %3068 = vmatmul.msk.bf16.gmra.mxu0 %vm510_vm1, %v3493_v44  ;;  %v3874_v17 = vpop.f32.mrf.mxu2 }
 0x234   : > { %4638 = vst [vmem:[#allocation47_spill] sm:$0xff] %v3874_v17  ;;  %v3876_v11 = vpop.f32.mrf.mxu1 }
 0x235   : > { %4639 = vst [vmem:[#allocation48_spill] sm:$0xff] %v3876_v11 }
 0x237   : > { %2983 = vmatmul.msk.bf16.gmra.mxu3 %vm510_vm1, %v3675_v45  ;;  %3025 = vmatmul.msk.bf16.gmra.mxu1 %vm510_vm1, %v3633_v20 }
 0x238   : > { %3042 = vmatmul.msk.bf16.gmra.mxu2 %vm510_vm1, %v3864_v9 }
 0x23a   : > { %v969_v24 = vpop.f32.mrf.mxu3 }
 0x23b   : > { %v3862_v2 = vadd.f32 %v969_v24, %v829_v56  ;;  %v3878_v56 = vpop.f32.mrf.mxu0  ;;  %v1453_v24 = vld [vmem:[#allocation2 + $0x181] sm:$0xff]  ;;  %v3889_v17 = vpop.f32.mrf.mxu2 }
 0x23c   : > { %4640 = vst [vmem:[#allocation49_spill] sm:$0xff] %v3878_v56  ;;  %v3891_v11 = vpop.f32.mrf.mxu1 }
 0x242   : > { %v971_v44 = vpop.f32.mrf.mxu3 }
 0x243   : > { %v3870_v38 = vadd.f32 %v971_v44, %v831_v48  ;;  %3069 = vmatmul.msk.bf16.gmra.mxu0 %vm510_vm1, %v3508_v61  ;;  %v3885_v44 = vpack.c.bf16 %v1454_v55, %v1453_v24  ;;  %v3887_v61 = vpack.c.bf16 %v1676_v63, %v1675_v60  ;;  %v3897_v56 = vpop.f32.mrf.mxu0  ;;  %v2618_v63 = vld [vmem:[%s4591_s5] sm:$0x3] }
 0x244   : > { %4641 = vst [vmem:[#allocation50_spill] sm:$0xff] %v3897_v56  ;;  %v3910_v24 = vpop.f32.mrf.mxu1 }
 0x247   : > { %2984 = vmatmul.msk.bf16.gmra.mxu3 %vm510_vm1, %v3695_v16  ;;  %3026 = vmatmul.msk.bf16.gmra.mxu1 %vm510_vm1, %v3885_v44 }
 0x248   : > { %3043 = vmatmul.msk.bf16.gmra.mxu2 %vm510_vm1, %v3887_v61 }
 0x24a   : > { %v974_v23 = vpop.f32.mrf.mxu3 }
 0x24b   : > { %v3883_v48 = vadd.f32 %v974_v23, %v3788_v62  ;;  %v2672_v23 = vsel %vm746_vm2, %v2618_v63, 0  ;;  %v3912_v55 = vpop.f32.mrf.mxu0 }
 0x24c   : > { %2681 = vmatpush.bf16.msra.mxu2 %v2672_v23  ;;  %4642 = vst [vmem:[#allocation51_spill] sm:$0xff] %v3912_v55 }
 0x252   : > { %v976_v3 = vpop.f32.mrf.mxu3 }
 0x253   : > { %v3900_v62 = vadd.f32 %v976_v3, %v3800_v22  ;;  %3070 = vmatmul.msk.bf16.gmra.mxu0 %vm510_vm1, %v3531_v26  ;;  %v3919_v26 = vpop.f32.mrf.mxu1  ;;  %v3921_v56 = vpop.f32.mrf.mxu0 }
 0x254   : > { %4643 = vst [vmem:[#allocation52_spill] sm:$0xff] %v3921_v56 }
 0x257   : > { %2985 = vmatmul.msk.bf16.gmra.mxu3 %vm510_vm1, %v3717_v30  ;;  %3079 = vmatmul.msk.bf16.vlgmr.msra.gmra.mxu1 %vm510_vm1, %v3599_v42 }
 0x25a   : > { %v1089_v60 = vpop.f32.mrf.mxu3 }
 0x25b   : > { %v3915_v3 = vadd.f32 %v1089_v60, %v3491_v43  ;;  %v3933_v60 = vpop.f32.mrf.mxu1  ;;  %v3935_v42 = vpop.f32.mrf.mxu0 }
 0x25c   : > { %4644 = vst [vmem:[#allocation53_spill] sm:$0xff] %v3935_v42 }
 0x262   : > { %v1091_v22 = vpop.f32.mrf.mxu3 }
 0x263   : > { %v3924_v63 = vadd.f32 %v1091_v22, %v3503_v52  ;;  %3071 = vmatmul.msk.bf16.gmra.mxu0 %vm510_vm1, %v3554_v58  ;;  %v3944_v58 = vpop.f32.mrf.mxu1  ;;  %v3946_v22 = vpop.f32.mrf.mxu0 }
 0x264   : > { %4645 = vst [vmem:[#allocation54_spill] sm:$0xff] %v3946_v22 }
 0x267   : > { %2986 = vmatmul.msk.bf16.gmra.mxu3 %vm510_vm1, %v3736_v54  ;;  %3080 = vmatmul.msk.bf16.gmra.mxu1 %vm510_vm1, %v3621_v4 }
 0x26a   : > { %v1094_v23 = vpop.f32.mrf.mxu3 }
 0x26b   : > { %v3931_v43 = vadd.f32 %v1094_v23, %v3519_v8  ;;  %v3955_v4 = vpop.f32.mrf.mxu1 }
 0x26c   : > { %4646 = vst [vmem:[#allocation55_spill] sm:$0xff] %v3955_v4  ;;  %v4684_v4 = vld [vmem:[#allocation24_spill] sm:$0xff] }
 0x272   : > { %v1096_v56 = vpop.f32.mrf.mxu3 }
 0x273   : > { %v3940_v52 = vadd.f32 %v1096_v56, %v3529_v25  ;;  %3072 = vmatmul.msk.bf16.gmra.mxu0 %vm510_vm1, %v3569_v12  ;;  %v3957_v25 = vpop.f32.mrf.mxu0  ;;  %v3966_v22 = vpop.f32.mrf.mxu1 }
 0x274   : > { %4647 = vst [vmem:[#allocation56_spill] sm:$0xff] %v3966_v22 }
 0x277   : > { %2987 = vmatmul.msk.bf16.gmra.mxu3 %vm510_vm1, %v3754_v28  ;;  %3081 = vmatmul.msk.bf16.gmra.mxu1 %vm510_vm1, %v3641_v37 }
 0x27a   : > { %v1099_v8 = vpop.f32.mrf.mxu3 }
 0x27b   : > { %v3951_v23 = vadd.f32 %v1099_v8, %v3544_v39  ;;  %v3968_v8 = vpop.f32.mrf.mxu0 }
 0x282   : > { %v1101_v56 = vpop.f32.mrf.mxu3 }
 0x283   : > { %v3960_v12 = vadd.f32 %v1101_v56, %v3552_v57  ;;  %3073 = vmatmul.msk.bf16.gmra.mxu0 %vm510_vm1, %v3591_v33  ;;  %v3980_v33 = vpop.f32.mrf.mxu1  ;;  %v3982_v56 = vpop.f32.mrf.mxu0 }
 0x284   : > { %4648 = vst [vmem:[#allocation57_spill] sm:$0xff] %v3980_v33 }
 0x287   : > { %2988 = vmatmul.msk.bf16.gmra.mxu3 %vm510_vm1, %v3770_v18  ;;  %3082 = vmatmul.msk.bf16.gmra.mxu1 %vm510_vm1, %v3659_v19 }
 0x28a   : > { %v1104_v39 = vpop.f32.mrf.mxu3 }
 0x28b   : > { %v3971_v37 = vadd.f32 %v1104_v39, %v3564_v6  ;;  %v3989_v39 = vpop.f32.mrf.mxu1 }
 0x28c   : > { %4649 = vst [vmem:[#allocation58_spill] sm:$0xff] %v3989_v39 }
 0x292   : > { %v1106_v42 = vpop.f32.mrf.mxu3 }
 0x293   : > { %v3976_v57 = vadd.f32 %v1106_v42, %v3576_v21  ;;  %3074 = vmatmul.msk.bf16.gmra.mxu0 %vm510_vm1, %v3610_v53  ;;  %v3993_v21 = vpop.f32.mrf.mxu0  ;;  %v4002_v42 = vpop.f32.mrf.mxu1 }
 0x294   : > { %4650 = vst [vmem:[#allocation59_spill] sm:$0xff] %v4002_v42 }
 0x297   : > { %2989 = vmatmul.msk.bf16.gmra.mxu3 %vm510_vm1, %v3792_v27  ;;  %3083 = vmatmul.msk.bf16.gmra.mxu1 %vm510_vm1, %v3675_v45 }
 0x29a   : > { %v1109_v55 = vpop.f32.mrf.mxu3 }
 0x29b   : > { %v3987_v6 = vadd.f32 %v1109_v55, %v3587_v29  ;;  %v4004_v29 = vpop.f32.mrf.mxu0  ;;  %v4011_v45 = vpop.f32.mrf.mxu1 }
 0x29c   : > { %4651 = vst [vmem:[#allocation60_spill] sm:$0xff] %v4011_v45 }
 0x2a2   : > { %v1111_v19 = vpop.f32.mrf.mxu3 }
 0x2a3   : > { %v3996_v53 = vadd.f32 %v1111_v19, %v3597_v40  ;;  %3075 = vmatmul.msk.bf16.gmra.mxu0 %vm510_vm1, %v3633_v20  ;;  %v4013_v19 = vpop.f32.mrf.mxu0 }
 0x2a7   : > { %2990 = vmatmul.msk.bf16.gmra.mxu3 %vm510_vm1, %v3816_v15  ;;  %3084 = vmatmul.msk.bf16.gmra.mxu1 %vm510_vm1, %v3695_v16 }
 0x2aa   : > { %v1114_v55 = vpop.f32.mrf.mxu3 }
 0x2ab   : > { %v4007_v39 = vadd.f32 %v1114_v55, %v3607_v47  ;;  %v4025_v55 = vpop.f32.mrf.mxu1 }
 0x2ac   : > { %4652 = vst [vmem:[#allocation61_spill] sm:$0xff] %v4025_v55 }
 0x2b2   : > { %v1116_v40 = vpop.f32.mrf.mxu3 }
 0x2b3   : > { %v4016_v20 = vadd.f32 %v1116_v40, %v3616_v0  ;;  %3076 = vmatmul.msk.bf16.gmra.mxu0 %vm510_vm1, %v3885_v44  ;;  %v4032_v0 = vpop.f32.mrf.mxu1 }
 0x2b4   : > { %4653 = vst [vmem:[#allocation62_spill] sm:$0xff] %v4032_v0 }
 0x2b7   : > { %2991 = vmatmul.msk.bf16.gmra.mxu3 %vm510_vm1, %v3838_v7  ;;  %3085 = vmatmul.msk.bf16.gmra.mxu1 %vm510_vm1, %v3717_v30  ;;  %v1869_v30 = vld [vmem:[#allocation2 + $0x38] sm:$0xff] }
 0x2ba   : > { %v1119_v42 = vpop.f32.mrf.mxu3 }
 0x2bb   : > { %v4023_v47 = vadd.f32 %v1119_v42, %v3630_v14  ;;  %v4041_v14 = vpop.f32.mrf.mxu1 }
 0x2bc   : > { %4654 = vst [vmem:[#allocation63_spill] sm:$0xff] %v4041_v14 }
 0x2c2   : > { %v1121_v16 = vpop.f32.mrf.mxu3 }
 0x2c3   : > { %v4030_v45 = vadd.f32 %v1121_v16, %v3639_v32  ;;  %v1868_v32 = vld [vmem:[#allocation2 + $0x30] sm:$0xff]  ;;  %v4047_v0 = vpop.f32.mrf.mxu1 }
 0x2c4   : > { %v1900_v16 = vpack.c.bf16 %v1869_v30, %v1868_v32  ;;  %4655 = vst [vmem:[#allocation64_spill] sm:$0xff] %v4047_v0 }
 0x2c7   : > { %2992 = vmatmul.msk.bf16.gmra.mxu3 %vm510_vm1, %v3864_v9  ;;  %3086 = vmatmul.msk.bf16.gmra.mxu1 %vm510_vm1, %v3736_v54 }
 0x2ca   : > { %v1124_v44 = vpop.f32.mrf.mxu3 }
 0x2cb   : > { %v4037_v40 = vadd.f32 %v1124_v44, %v3649_v51  ;;  %v1871_v44 = vld [vmem:[#allocation2 + $0x50] sm:$0xff] }
 0x2d2   : > { %v1126_v42 = vpop.f32.mrf.mxu3 }
 0x2d3   : > { %v4044_v55 = vadd.f32 %v1126_v42, %v3655_v10  ;;  %v4057_v10 = vpop.f32.mrf.mxu1  ;;  %v1870_v42 = vld [vmem:[#allocation2 + $0x48] sm:$0xff] }
 0x2d4   : > { %4656 = vst [vmem:[#allocation65_spill] sm:$0xff] %v4057_v10  ;;  %v1901_v30 = vpack.c.bf16 %v1871_v44, %v1870_v42 }
 0x2d7   : > { %3045 = vmatmul.msk.bf16.vlgmr.msra.gmra.mxu3 %vm510_vm1, %v1900_v16  ;;  %3087 = vmatmul.msk.bf16.gmra.mxu1 %vm510_vm1, %v3754_v28 }
 0x2da   : > { %v1129_v33 = vpop.f32.mrf.mxu3 }
 0x2db   : > { %v4050_v51 = vadd.f32 %v1129_v33, %v3667_v41  ;;  %v4063_v41 = vpop.f32.mrf.mxu1  ;;  %v1873_v33 = vld [vmem:[#allocation2 + $0x68] sm:$0xff] }
 0x2dc   : > { %4657 = vst [vmem:[#allocation66_spill] sm:$0xff] %v4063_v41 }
 0x2e2   : > { %v1131_v54 = vpop.f32.mrf.mxu3 }
 0x2e3   : > { %v4055_v14 = vadd.f32 %v1131_v54, %v3673_v1  ;;  %v1872_v54 = vld [vmem:[#allocation2 + $0x60] sm:$0xff]  ;;  %v4071_v44 = vpop.f32.mrf.mxu1 }
 0x2e4   : > { %v1902_v10 = vpack.c.bf16 %v1873_v33, %v1872_v54  ;;  %4659 = vst [vmem:[#allocation68_spill] sm:$0xff] %v4071_v44  ;;  %v1874_v33 = vld [vmem:[#allocation2 + $0x78] sm:$0xff]  ;;  %v1876_v44 = vld [vmem:[#allocation2 + $0x90] sm:$0xff] }
 0x2e7   : > { %3046 = vmatmul.msk.bf16.gmra.mxu3 %vm510_vm1, %v1901_v30  ;;  %3088 = vmatmul.msk.bf16.gmra.mxu1 %vm510_vm1, %v3770_v18 }
 0x2ea   : > { %v1134_v32 = vpop.f32.mrf.mxu3 }
 0x2eb   : > { %v4061_v16 = vadd.f32 %v1134_v32, %v3683_v13  ;;  %v4078_v30 = vpop.f32.mrf.mxu1  ;;  %v1875_v32 = vld [vmem:[#allocation2 + $0x80] sm:$0xff] }
 0x2ec   : > { %4661 = vst [vmem:[#allocation70_spill] sm:$0xff] %v4078_v30 }
 0x2f2   : > { %v1136_v28 = vpop.f32.mrf.mxu3 }
 0x2f3   : > { %v4068_v1 = vadd.f32 %v1136_v28, %v3693_v5  ;;  %v4083_v28 = vpop.f32.mrf.mxu2 }
 0x2f5   : > { %4658 = vst [vmem:[#allocation67_spill] sm:$0xff] %v4068_v1  ;;  %v4683_v1 = vld [vmem:[#allocation35_spill] sm:$0xff] }
 0x2f7   : > { %3047 = vmatmul.msk.bf16.gmra.mxu3 %vm510_vm1, %v1902_v10  ;;  %3089 = vmatmul.msk.bf16.gmra.mxu1 %vm510_vm1, %v3792_v27  ;;  %v1903_v10 = vpack.c.bf16 %v1875_v32, %v1874_v33 }
 0x2fa   : > { %v1139_v42 = vpop.f32.mrf.mxu3 }
 0x2fb   : > { %v4074_v13 = vadd.f32 %v1139_v42, %v3705_v35  ;;  %v4089_v42 = vpop.f32.mrf.mxu1  ;;  %v4091_v27 = vpop.f32.mrf.mxu2 }
 0x2fd   : > { %4660 = vst [vmem:[#allocation69_spill] sm:$0xff] %v4074_v13 }
 0x302   : > { %v1141_v18 = vpop.f32.mrf.mxu3 }
 0x303   : > { %v4081_v5 = vadd.f32 %v1141_v18, %v3715_v34  ;;  %v1877_v34 = vld [vmem:[#allocation2 + $0x98] sm:$0xff]  ;;  %v4098_v33 = vpop.f32.mrf.mxu1 }
 0x304   : > { %v1904_v32 = vpack.c.bf16 %v1877_v34, %v1876_v44  ;;  %v1878_v34 = vld [vmem:[#allocation2 + $0xa8] sm:$0xff] }
 0x305   : > { %4662 = vst [vmem:[#allocation71_spill] sm:$0xff] %v4081_v5 }
 0x307   : > { %3048 = vmatmul.msk.bf16.gmra.mxu3 %vm510_vm1, %v1903_v10  ;;  %3090 = vmatmul.msk.bf16.gmra.mxu1 %vm510_vm1, %v3816_v15 }
 0x30a   : > { %v1144_v54 = vpop.f32.mrf.mxu3 }
 0x30b   : > { %v4087_v35 = vadd.f32 %v1144_v54, %v3725_v50  ;;  %v4101_v50 = vpop.f32.mrf.mxu2  ;;  %v4108_v15 = vpop.f32.mrf.mxu1 }
 0x30d   : > { %4663 = vst [vmem:[#allocation72_spill] sm:$0xff] %v4087_v35  ;;  %v1885_v35 = vld [vmem:[#allocation2 + $0xf8] sm:$0xff] }
 0x312   : > { %v1146_v30 = vpop.f32.mrf.mxu3 }
 0x313   : > { %v4096_v18 = vadd.f32 %v1146_v30, %v3732_v46  ;;  %v4110_v41 = vpop.f32.mrf.mxu2  ;;  %v1879_v30 = vld [vmem:[#allocation2 + $0xb0] sm:$0xff]  ;;  %v4116_v0 = vpop.f32.mrf.mxu1 }
 0x315   : > { %4664 = vst [vmem:[#allocation73_spill] sm:$0xff] %v4096_v18  ;;  %v1881_v18 = vld [vmem:[#allocation2 + $0xc8] sm:$0xff] }
 0x317   : > { %3049 = vmatmul.msk.bf16.gmra.mxu3 %vm510_vm1, %v1904_v32  ;;  %3091 = vmatmul.msk.bf16.gmra.mxu1 %vm510_vm1, %v3838_v7  ;;  %v1905_v32 = vpack.c.bf16 %v1879_v30, %v1878_v34  ;;  %v1880_v30 = vld [vmem:[#allocation2 + $0xc0] sm:$0xff] }
 0x318   : > { %v1906_v34 = vpack.c.bf16 %v1881_v18, %v1880_v30  ;;  %v1882_v18 = vld [vmem:[#allocation2 + $0xd8] sm:$0xff] }
 0x31a   : > { %v1149_v10 = vpop.f32.mrf.mxu3 }
 0x31b   : > { %v4104_v54 = vadd.f32 %v1149_v10, %v3812_v36  ;;  %v4121_v7 = vpop.f32.mrf.mxu2 }
 0x31d   : > { %4665 = vst [vmem:[#allocation74_spill] sm:$0xff] %v4104_v54 }
 0x322   : > { %v1151_v46 = vpop.f32.mrf.mxu3 }
 0x323   : > { %v4113_v44 = vadd.f32 %v1151_v46, %v3824_v31  ;;  %v4128_v46 = vpop.f32.mrf.mxu1 }
 0x325   : > { %4666 = vst [vmem:[#allocation75_spill] sm:$0xff] %v4113_v44 }
 0x327   : > { %3050 = vmatmul.msk.bf16.gmra.mxu3 %vm510_vm1, %v1905_v32  ;;  %3092 = vmatmul.msk.bf16.gmra.mxu1 %vm510_vm1, %v3864_v9  ;;  %v4130_v32 = vpop.f32.mrf.mxu2 }
 0x32a   : > { %v1154_v36 = vpop.f32.mrf.mxu3 }
 0x32b   : > { %v4119_v10 = vadd.f32 %v1154_v36, %v3836_v49 }
 0x32d   : > { %4667 = vst [vmem:[#allocation76_spill] sm:$0xff] %v4119_v10  ;;  %v4136_v10 = vpop.f32.mrf.mxu1 }
 0x32f   : > { %v4140_v9 = vpop.f32.mrf.mxu2 }
 0x332   : > { %v1156_v54 = vpop.f32.mrf.mxu3 }
 0x333   : > { %v4126_v31 = vadd.f32 %v1156_v54, %v3850_v59  ;;  %v1883_v54 = vld [vmem:[#allocation2 + $0xe0] sm:$0xff] }
 0x334   : > { %v1907_v30 = vpack.c.bf16 %v1883_v54, %v1882_v18  ;;  %v4674_v18 = vld [vmem:[#allocation19_spill] sm:$0xff] }
 0x335   : > { %4668 = vst [vmem:[#allocation77_spill] sm:$0xff] %v4126_v31  ;;  %v4165_v22 = vpop.f32.mrf.mxu1 }
 0x337   : > { %3051 = vmatmul.msk.bf16.gmra.mxu3 %vm510_vm1, %v1906_v34  ;;  %3093 = vmatmul.msk.bf16.gmra.mxu1 %vm510_vm1, %v3887_v61  ;;  %v4146_v34 = vpop.f32.mrf.mxu2 }
 0x33a   : > { %v1159_v49 = vpop.f32.mrf.mxu3 }
 0x33b   : > { %v4134_v36 = vadd.f32 %v1159_v49, %v3862_v2 }
 0x33d   : > { %4669 = vst [vmem:[#allocation78_spill] sm:$0xff] %v4134_v36  ;;  %v4672_v36 = vld [vmem:[#allocation3_spill] sm:$0xff] }
 0x33e   : > { %v1391_v61 = vadd.f32 %v4672_v36, %v3915_v3  ;;  %v4163_v3 = vpop.f32.mrf.mxu0 }
 0x342   : > { %v1161_v59 = vpop.f32.mrf.mxu3 }
 0x343   : > { %v4143_v31 = vadd.f32 %v1161_v59, %v3870_v38  ;;  %v4156_v38 = vpop.f32.mrf.mxu2  ;;  %v1884_v59 = vld [vmem:[#allocation2 + $0xf0] sm:$0xff] }
 0x344   : > { %v1908_v54 = vpack.c.bf16 %v1885_v35, %v1884_v59 }
 0x345   : > { %4670 = vst [vmem:[#allocation79_spill] sm:$0xff] %v4143_v31  ;;  %v4675_v31 = vld [vmem:[#allocation4_spill] sm:$0xff] }
 0x347   : > { %3052 = vmatmul.msk.bf16.gmra.mxu3 %vm510_vm1, %v1907_v30  ;;  %v1613_v30 = vadd.f32 %v4674_v18, %v1391_v61  ;;  %v4679_v61 = vld [vmem:[#allocation5_spill] sm:$0xff] }
 0x348   : > { %v1393_v59 = vadd.f32 %v4679_v61, %v3931_v43  ;;  %v4184_v61 = vpop.f32.mrf.mxu1 }
 0x34a   : > { %v1164_v2 = vpop.f32.mrf.mxu3 }
 0x34b   : > { %v4149_v49 = vadd.f32 %v1164_v2, %v3883_v48  ;;  %v1392_v48 = vadd.f32 %v4675_v31, %v3924_v63  ;;  %v4676_v2 = vld [vmem:[#allocation29_spill] sm:$0xff]  ;;  %v1887_v31 = vld [vmem:[#allocation2 + $0x110] sm:$0xff] }
 0x34d   : > { %4671 = vst [vmem:[#allocation80_spill] sm:$0xff] %v4149_v49  ;;  %v1835_v49 = vadd.f32 %v4676_v2, %v1613_v30  ;;  %v4180_v2 = vpop.f32.mrf.mxu0 }
 0x352   : > { %v1166_v44 = vpop.f32.mrf.mxu3 }
 0x353   : > { %v4154_v5 = vadd.f32 %v1166_v44, %v3900_v62  ;;  %v4677_v62 = vld [vmem:[#allocation21_spill] sm:$0xff] }
 0x354   : > { %v1614_v44 = vadd.f32 %v4677_v62, %v1392_v48  ;;  %v1886_v48 = vld [vmem:[#allocation2 + $0x108] sm:$0xff]  ;;  %v4681_v62 = vld [vmem:[#allocation23_spill] sm:$0xff] }
 0x355   : > { %4673 = vst [vmem:[#allocation3_spill] sm:$0xff] %v4154_v5  ;;  %v4168_v5 = vpop.f32.mrf.mxu2  ;;  %v1615_v43 = vadd.f32 %v4681_v62, %v1393_v59 }
 0x356   : > { %4678 = vst [vmem:[#allocation19_spill] sm:$0xff] %v4168_v5  ;;  %v4196_v5 = vpop.f32.mrf.mxu0 }
 0x357   : > { %3053 = vmatmul.msk.bf16.gmra.mxu3 %vm510_vm1, %v1908_v54  ;;  %v4680_v54 = vld [vmem:[#allocation32_spill] sm:$0xff] }
 0x358   : > { %v1836_v18 = vadd.f32 %v4680_v54, %v1614_v44  ;;  %v4682_v54 = vld [vmem:[#allocation6_spill] sm:$0xff] }
 0x35a   : > { %v1978_v13 = vpop.f32.mrf.mxu3 }
 0x35b   : > { %v2058_v36 = vadd.f32 %v1978_v13, %v1835_v49  ;;  %v4178_v13 = vld [vmem:[%s4590_s4] ss:$0 sm:$0xff] }
 0x35d   : > { %v2280_v35 = vadd.f32 %v3957_v25, %v2058_v36  ;;  %v1909_v36 = vpack.c.bf16 %v1887_v31, %v1886_v48 }
 0x35f   : > { %v2502_v30 = vadd.f32 %v4089_v42, %v2280_v35  ;;  %v4189_v35 = vpop.f32.mrf.mxu2 }
 0x361   : > { %v2538_v44 = vadd.f32 %v4178_v13, %v2502_v30 }
 0x362   : > { %v1980_v63 = vpop.f32.mrf.mxu3 }
 0x363   : > { %v2059_v49 = vadd.f32 %v1980_v63, %v1836_v18  ;;  %v1394_v18 = vadd.f32 %v4682_v54, %v3940_v52  ;;  %v1889_v54 = vld [vmem:[#allocation2 + $0x128] sm:$0xff] }
 0x365   : > { %v2281_v25 = vadd.f32 %v3968_v8, %v2059_v49  ;;  %v1837_v8 = vadd.f32 %v4683_v1, %v1615_v43  ;;  %v2570_v49 = vmax.f32 %v2538_v44, 0.0  ;;  %v1616_v30 = vadd.f32 %v4684_v4, %v1394_v18  ;;  %v1888_v18 = vld [vmem:[#allocation2 + $0x120] sm:$0xff] }
 0x367   : > { %v2503_v42 = vadd.f32 %v4098_v33, %v2281_v25  ;;  %3054 = vmatmul.msk.bf16.gmra.mxu3 %vm510_vm1, %v1909_v36  ;;  %v4685_v25 = vld [vmem:[#allocation7_spill] sm:$0xff]  ;;  %v4202_v36 = vpop.f32.mrf.mxu1  ;;  %v4205_v43 = vpop.f32.mrf.mxu2 }
 0x368   : > { %v1395_v52 = vadd.f32 %v4685_v25, %v3951_v23 }
 0x369   : > { %v2539_v63 = vadd.f32 %v4178_v13, %v2503_v42  ;;  %v4686_v42 = vld [vmem:[#allocation38_spill] sm:$0xff] }
 0x36a   : > { %v1983_v31 = vpop.f32.mrf.mxu3  ;;  %v1838_v1 = vadd.f32 %v4686_v42, %v1616_v30  ;;  %v4215_v30 = vpop.f32.mrf.mxu0 }
 0x36b   : > { %v2571_v59 = vmax.f32 %v2539_v63, 0.0  ;;  %v2060_v48 = vadd.f32 %v1983_v31, %v1837_v8  ;;  %v4687_v31 = vld [vmem:[#allocation26_spill] sm:$0xff] }
 0x36d   : > { %v2602_v62 = vpack.c.bf16 %v2571_v59, %v2570_v49  ;;  %v2282_v33 = vadd.f32 %v3982_v56, %v2060_v48  ;;  %v1910_v56 = vpack.c.bf16 %v1889_v54, %v1888_v18  ;;  %v1617_v49 = vadd.f32 %v4687_v31, %v1395_v52  ;;  %v4688_v48 = vld [vmem:[#allocation8_spill] sm:$0xff] }
 0x36f   : > { %3095 = vmatmul.msk.bf16.vlgmr.msra.gmra.mxu2 %vm510_vm1, %v2602_v62  ;;  %v2504_v63 = vadd.f32 %v4108_v15, %v2282_v33  ;;  %v1396_v62 = vadd.f32 %v4688_v48, %v3960_v12  ;;  %v4689_v33 = vld [vmem:[#allocation41_spill] sm:$0xff]  ;;  %v4221_v54 = vpop.f32.mrf.mxu2 }
 0x370   : > { %v1839_v25 = vadd.f32 %v4689_v33, %v1617_v49  ;;  %v4691_v12 = vld [vmem:[#allocation9_spill] sm:$0xff] }
 0x371   : > { %v2540_v59 = vadd.f32 %v4178_v13, %v2504_v63  ;;  %v4690_v63 = vld [vmem:[#allocation28_spill] sm:$0xff]  ;;  %v1891_v48 = vld [vmem:[#allocation2 + $0x140] sm:$0xff] }
 0x372   : > { %v1985_v44 = vpop.f32.mrf.mxu3 }
 0x373   : > { %v2061_v4 = vadd.f32 %v1985_v44, %v1838_v1  ;;  %v2572_v1 = vmax.f32 %v2540_v59, 0.0  ;;  %v4229_v59 = vpop.f32.mrf.mxu0 }
 0x375   : > { %v2283_v8 = vadd.f32 %v3993_v21, %v2061_v4  ;;  %v4219_v21 = vpop.f32.mrf.mxu1  ;;  %v1618_v4 = vadd.f32 %v4690_v63, %v1396_v62 }
 0x377   : > { %v2505_v23 = vadd.f32 %v4116_v0, %v2283_v8  ;;  %3055 = vmatmul.msk.bf16.gmra.mxu3 %vm510_vm1, %v1910_v56  ;;  %v1397_v8 = vadd.f32 %v4691_v12, %v3971_v37  ;;  %v4692_v56 = vld [vmem:[#allocation44_spill] sm:$0xff] }
 0x378   : > { %v1840_v31 = vadd.f32 %v4692_v56, %v1618_v4  ;;  %v4695_v4 = vld [vmem:[#allocation47_spill] sm:$0xff] }
 0x379   : > { %v2541_v15 = vadd.f32 %v4178_v13, %v2505_v23  ;;  %v1890_v23 = vld [vmem:[#allocation2 + $0x138] sm:$0xff] }
 0x37a   : > { %v1988_v42 = vpop.f32.mrf.mxu3 }
 0x37b   : > { %v2573_v52 = vmax.f32 %v2541_v15, 0.0  ;;  %v2062_v44 = vadd.f32 %v1988_v42, %v1839_v25  ;;  %v4693_v42 = vld [vmem:[#allocation31_spill] sm:$0xff] }
 0x37d   : > { %v2603_v0 = vpack.c.bf16 %v2573_v52, %v2572_v1  ;;  %v2284_v18 = vadd.f32 %v4004_v29, %v2062_v44  ;;  %v4232_v25 = vpop.f32.mrf.mxu1  ;;  %v1911_v29 = vpack.c.bf16 %v1891_v48, %v1890_v23  ;;  %v1619_v1 = vadd.f32 %v4693_v42, %v1397_v8  ;;  %v4236_v52 = vpop.f32.mrf.mxu2  ;;  %v4696_v23 = vld [vmem:[#allocation34_spill] sm:$0xff] }
 0x37e   : > { %v4245_v8 = vpop.f32.mrf.mxu0 }
 0x37f   : > { %3096 = vmatmul.msk.bf16.gmra.mxu2 %vm510_vm1, %v2603_v0  ;;  %v2506_v15 = vadd.f32 %v4128_v46, %v2284_v18  ;;  %v4694_v0 = vld [vmem:[#allocation10_spill] sm:$0xff]  ;;  %v1841_v18 = vadd.f32 %v4695_v4, %v1619_v1  ;;  %v1892_v1 = vld [vmem:[#allocation2 + $0x150] sm:$0xff]  ;;  %v4698_v4 = vld [vmem:[#allocation36_spill] sm:$0xff] }
 0x380   : > { %v1398_v63 = vadd.f32 %v4694_v0, %v3976_v57 }
 0x381   : > { %v2542_v37 = vadd.f32 %v4178_v13, %v2506_v15 }
 0x382   : > { %v1990_v49 = vpop.f32.mrf.mxu3  ;;  %v1620_v48 = vadd.f32 %v4696_v23, %v1398_v63 }
 0x383   : > { %v2063_v33 = vadd.f32 %v1990_v49, %v1840_v31 }
 0x385   : > { %v2285_v62 = vadd.f32 %v4013_v19, %v2063_v33  ;;  %v2574_v19 = vmax.f32 %v2542_v37, 0.0  ;;  %v4248_v15 = vpop.f32.mrf.mxu1  ;;  %v4252_v57 = vpop.f32.mrf.mxu2  ;;  %v4697_v33 = vld [vmem:[#allocation11_spill] sm:$0xff]  ;;  %v1893_v37 = vld [vmem:[#allocation2 + $0x158] sm:$0xff] }
 0x387   : > { %v2507_v44 = vadd.f32 %v4136_v10, %v2285_v62  ;;  %3056 = vmatmul.msk.bf16.gmra.mxu3 %vm510_vm1, %v1911_v29  ;;  %v1399_v62 = vadd.f32 %v4697_v33, %v3987_v6  ;;  %v1842_v29 = vadd.f32 %v3889_v17, %v1620_v48  ;;  %v4699_v17 = vld [vmem:[#allocation12_spill] sm:$0xff] }
 0x388   : > { %v1400_v6 = vadd.f32 %v4699_v17, %v3996_v53  ;;  %v4701_v53 = vld [vmem:[#allocation13_spill] sm:$0xff] }
 0x389   : > { %v2543_v46 = vadd.f32 %v4178_v13, %v2507_v44 }
 0x38a   : > { %v1993_v12 = vpop.f32.mrf.mxu3 }
 0x38b   : > { %v2575_v56 = vmax.f32 %v2543_v46, 0.0  ;;  %v2064_v31 = vadd.f32 %v1993_v12, %v1841_v18  ;;  %v1912_v46 = vpack.c.bf16 %v1893_v37, %v1892_v1  ;;  %v4260_v18 = vpop.f32.mrf.mxu0 }
 0x38d   : > { %v2604_v49 = vpack.c.bf16 %v2575_v56, %v2574_v19  ;;  %v2286_v10 = vadd.f32 %v4163_v3, %v2064_v31  ;;  %v1621_v3 = vadd.f32 %v4698_v4, %v1399_v62  ;;  %v4267_v56 = vpop.f32.mrf.mxu1  ;;  %v4271_v31 = vpop.f32.mrf.mxu2  ;;  %v4700_v62 = vld [vmem:[#allocation39_spill] sm:$0xff] }
 0x38f   : > { %3097 = vmatmul.msk.bf16.gmra.mxu2 %vm510_vm1, %v2604_v49  ;;  %v2508_v44 = vadd.f32 %v4165_v22, %v2286_v10 }
 0x391   : > { %v2544_v12 = vadd.f32 %v4178_v13, %v2508_v44  ;;  %v1894_v44 = vld [vmem:[#allocation2 + $0x168] sm:$0xff] }
 0x392   : > { %v1995_v42 = vpop.f32.mrf.mxu3 }
 0x393   : > { %v2065_v0 = vadd.f32 %v1995_v42, %v1842_v29  ;;  %v2576_v23 = vmax.f32 %v2544_v12, 0.0  ;;  %v1401_v42 = vadd.f32 %v4701_v53, %v4007_v39  ;;  %v4278_v1 = vpop.f32.mrf.mxu0 }
 0x395   : > { %v2287_v63 = vadd.f32 %v4180_v2, %v2065_v0  ;;  %v1843_v2 = vadd.f32 %v4083_v28, %v1621_v3  ;;  %v1895_v0 = vld [vmem:[#allocation2 + $0x170] sm:$0xff]  ;;  %v4284_v3 = vpop.f32.mrf.mxu2 }
 0x396   : > { %v1913_v12 = vpack.c.bf16 %v1895_v0, %v1894_v44  ;;  %v4705_v0 = vld [vmem:[#allocation15_spill] sm:$0xff] }
 0x397   : > { %v2509_v19 = vadd.f32 %v4184_v61, %v2287_v63  ;;  %3057 = vmatmul.msk.bf16.gmra.mxu3 %vm510_vm1, %v1912_v46  ;;  %v1622_v61 = vadd.f32 %v4700_v62, %v1400_v6  ;;  %v4281_v63 = vpop.f32.mrf.mxu1  ;;  %v2121_v62 = vld [vmem:[#allocation2 + $0x1a1] sm:$0xff] }
 0x399   : > { %v2545_v22 = vadd.f32 %v4178_v13, %v2509_v19  ;;  %v1844_v28 = vadd.f32 %v4091_v27, %v1622_v61  ;;  %v4702_v19 = vld [vmem:[#allocation42_spill] sm:$0xff]  ;;  %v2342_v61 = vld [vmem:[#allocation2 + $0x19a] sm:$0xff] }
 0x39a   : > { %v1998_v49 = vpop.f32.mrf.mxu3  ;;  %v1623_v17 = vadd.f32 %v4702_v19, %v1401_v42  ;;  %v4703_v27 = vld [vmem:[#allocation14_spill] sm:$0xff]  ;;  %v4704_v42 = vld [vmem:[#allocation45_spill] sm:$0xff] }
 0x39b   : > { %v2577_v48 = vmax.f32 %v2545_v22, 0.0  ;;  %v2066_v10 = vadd.f32 %v1998_v49, %v1843_v2  ;;  %v1402_v22 = vadd.f32 %v4703_v27, %v4016_v20  ;;  %v1897_v19 = vld [vmem:[#allocation2 + $0x188] sm:$0xff] }
 0x39d   : > { %v2605_v33 = vpack.c.bf16 %v2577_v48, %v2576_v23  ;;  %v2288_v29 = vadd.f32 %v4196_v5, %v2066_v10  ;;  %v4295_v23 = vpop.f32.mrf.mxu0  ;;  %v4300_v44 = vpop.f32.mrf.mxu2 }
 0x39f   : > { %3098 = vmatmul.msk.bf16.gmra.mxu2 %vm510_vm1, %v2605_v33  ;;  %v2510_v46 = vadd.f32 %v4202_v36, %v2288_v29  ;;  %v1845_v36 = vadd.f32 %v4101_v50, %v1623_v17  ;;  %v2120_v33 = vld [vmem:[#allocation2 + $0x199] sm:$0xff]  ;;  %v2343_v29 = vld [vmem:[#allocation2 + $0x1a2] sm:$0xff] }
 0x3a0   : > { %v2137_v20 = vpack.c.bf16 %v2121_v62, %v2120_v33 }
 0x3a1   : > { %v2546_v39 = vadd.f32 %v4178_v13, %v2510_v46  ;;  %v1403_v46 = vadd.f32 %v4705_v0, %v4023_v47 }
 0x3a2   : > { %v2000_v37 = vpop.f32.mrf.mxu3  ;;  %3077 = vmatmul.msk.bf16.gmra.mxu0 %vm510_vm1, %v2137_v20  ;;  %v1899_v20 = vld [vmem:[#allocation2 + $0x1a0] sm:$0xff] }
 0x3a3   : > { %v2067_v4 = vadd.f32 %v2000_v37, %v1844_v28  ;;  %v1624_v28 = vadd.f32 %v4704_v42, %v1402_v22  ;;  %v2359_v37 = vpack.c.bf16 %v2343_v29, %v2342_v61  ;;  %v4706_v22 = vld [vmem:[#allocation48_spill] sm:$0xff] }
 0x3a5   : > { %v2289_v5 = vadd.f32 %v4215_v30, %v2067_v4  ;;  %v2578_v30 = vmax.f32 %v2546_v39, 0.0  ;;  %3094 = vmatmul.msk.bf16.gmra.mxu1 %vm510_vm1, %v2359_v37  ;;  %v1846_v4 = vadd.f32 %v4110_v41, %v1624_v28  ;;  %v4315_v47 = vpop.f32.mrf.mxu2  ;;  %v4707_v41 = vld [vmem:[#allocation16_spill] sm:$0xff] }
 0x3a6   : > { %v1898_v28 = vld [vmem:[#allocation2 + $0x198] sm:$0xff] }
 0x3a7   : > { %v2511_v6 = vadd.f32 %v4219_v21, %v2289_v5  ;;  %3058 = vmatmul.msk.bf16.gmra.mxu3 %vm510_vm1, %v1913_v12  ;;  %v4297_v21 = vpop.f32.mrf.mxu1  ;;  %v1896_v12 = vld [vmem:[#allocation2 + $0x180] sm:$0xff] }
 0x3a8   : > { %v1914_v27 = vpack.c.bf16 %v1897_v19, %v1896_v12 }
 0x3a9   : > { %v2547_v2 = vadd.f32 %v4178_v13, %v2511_v6  ;;  %v2237_v6 = vpop.f32.mrf.mxu0 }
 0x3aa   : > { %v2003_v49 = vpop.f32.mrf.mxu3 }
 0x3ab   : > { %v2579_v48 = vmax.f32 %v2547_v2, 0.0  ;;  %v2068_v10 = vadd.f32 %v2003_v49, %v1845_v36  ;;  %v1625_v2 = vadd.f32 %v4706_v22, %v1403_v46 }
 0x3ad   : > { %v2606_v53 = vpack.c.bf16 %v2579_v48, %v2578_v30  ;;  %v2290_v50 = vadd.f32 %v4229_v59, %v2068_v10  ;;  %v1404_v48 = vadd.f32 %v4707_v41, %v4030_v45  ;;  %v1847_v10 = vadd.f32 %v4121_v7, %v1625_v2  ;;  %v4708_v45 = vld [vmem:[#allocation17_spill] sm:$0xff]  ;;  %v4327_v0 = vpop.f32.mrf.mxu2 }
 0x3ae   : > { %v1405_v37 = vadd.f32 %v4708_v45, %v4037_v40  ;;  %v4709_v40 = vld [vmem:[#allocation18_spill] sm:$0xff] }
 0x3af   : > { %3099 = vmatmul.msk.bf16.gmra.mxu2 %vm510_vm1, %v2606_v53  ;;  %v2512_v17 = vadd.f32 %v4232_v25, %v2290_v50  ;;  %v2459_v36 = vpop.f32.mrf.mxu1  ;;  %v1626_v53 = vadd.f32 %v3891_v11, %v1404_v48  ;;  %v1915_v11 = vpack.c.bf16 %v1899_v20, %v1898_v28 }
 0x3b1   : > { %v2548_v49 = vadd.f32 %v4178_v13, %v2512_v17  ;;  %v2240_v42 = vpop.f32.mrf.mxu0  ;;  %v1848_v7 = vadd.f32 %v4130_v32, %v1626_v53  ;;  %v1406_v32 = vadd.f32 %v4709_v40, %v4044_v55  ;;  %v4710_v55 = vld [vmem:[#allocation20_spill] sm:$0xff]  ;;  %v4714_v40 = vld [vmem:[#allocation55_spill] sm:$0xff] }
 0x3b2   : > { %v2005_v5 = vpop.f32.mrf.mxu3  ;;  %v1407_v48 = vadd.f32 %v4710_v55, %v4050_v51 }
 0x3b3   : > { %v2069_v39 = vadd.f32 %v2005_v5, %v1846_v4  ;;  %v2580_v33 = vmax.f32 %v2548_v49, 0.0 }
 0x3b5   : > { %v2291_v59 = vadd.f32 %v4245_v8, %v2069_v39 }
 0x3b7   : > { %v2513_v30 = vadd.f32 %v4248_v15, %v2291_v59  ;;  %3059 = vmatmul.msk.bf16.gmra.mxu3 %vm510_vm1, %v1914_v27  ;;  %v2462_v50 = vpop.f32.mrf.mxu1 }
 0x3b9   : > { %v2549_v25 = vadd.f32 %v4178_v13, %v2513_v30  ;;  %v2242_v39 = vpop.f32.mrf.mxu0 }
 0x3ba   : > { %v2008_v8 = vpop.f32.mrf.mxu3 }
 0x3bb   : > { %v2581_v62 = vmax.f32 %v2549_v25, 0.0  ;;  %v2070_v61 = vadd.f32 %v2008_v8, %v1847_v10 }
 0x3bd   : > { %v2607_v29 = vpack.c.bf16 %v2581_v62, %v2580_v33  ;;  %v2292_v15 = vadd.f32 %v4260_v18, %v2070_v61  ;;  %v1627_v18 = vadd.f32 %v3910_v24, %v1405_v37  ;;  %v4339_v24 = vpop.f32.mrf.mxu2 }
 0x3bf   : > { %3100 = vmatmul.msk.bf16.gmra.mxu2 %vm510_vm1, %v2607_v29  ;;  %v2514_v4 = vadd.f32 %v4267_v56, %v2292_v15  ;;  %v1849_v56 = vadd.f32 %v4140_v9, %v1627_v18  ;;  %v2464_v22 = vpop.f32.mrf.mxu1  ;;  %v1629_v29 = vadd.f32 %v3933_v60, %v1407_v48  ;;  %v4711_v15 = vld [vmem:[#allocation22_spill] sm:$0xff]  ;;  %v4717_v48 = vld [vmem:[#allocation56_spill] sm:$0xff] }
 0x3c0   : > { %v1408_v28 = vadd.f32 %v4711_v15, %v4055_v14  ;;  %v4712_v14 = vld [vmem:[#allocation25_spill] sm:$0xff] }
 0x3c1   : > { %v2550_v19 = vadd.f32 %v4178_v13, %v2514_v4  ;;  %v2245_v10 = vpop.f32.mrf.mxu0 }
 0x3c2   : > { %v2010_v46 = vpop.f32.mrf.mxu3  ;;  %v1630_v60 = vadd.f32 %v3944_v58, %v1408_v28 }
 0x3c3   : > { %v2071_v5 = vadd.f32 %v2010_v46, %v1848_v7  ;;  %v2582_v2 = vmax.f32 %v2550_v19, 0.0 }
 0x3c5   : > { %v2293_v12 = vadd.f32 %v4278_v1, %v2071_v5  ;;  %v4349_v53 = vpop.f32.mrf.mxu2  ;;  %v1409_v5 = vadd.f32 %v4712_v14, %v4061_v16 }
 0x3c7   : > { %v2515_v17 = vadd.f32 %v4281_v63, %v2293_v12  ;;  %3060 = vmatmul.msk.bf16.gmra.mxu3 %vm510_vm1, %v1915_v11  ;;  %v1628_v63 = vadd.f32 %v3919_v26, %v1406_v32  ;;  %v2467_v62 = vpop.f32.mrf.mxu1  ;;  %v4713_v11 = vld [vmem:[#allocation19_spill] sm:$0xff]  ;;  %v1631_v32 = vadd.f32 %v4714_v40, %v1409_v5 }
 0x3c8   : > { %v1852_v12 = vadd.f32 %v4713_v11, %v1630_v60  ;;  %v4721_v60 = vld [vmem:[#allocation71_spill] sm:$0xff] }
 0x3c9   : > { %v2551_v59 = vadd.f32 %v4178_v13, %v2515_v17  ;;  %v1850_v25 = vadd.f32 %v4146_v34, %v1628_v63  ;;  %v1851_v34 = vadd.f32 %v4156_v38, %v1629_v29  ;;  %v2247_v7 = vpop.f32.mrf.mxu0  ;;  %v1853_v16 = vadd.f32 %v4189_v35, %v1631_v32  ;;  %v3132_v32 = vld [vmem:[%s3231_s8 + $0x8] sm:$0xff] }
 0x3ca   : > { %v2013_v27 = vpop.f32.mrf.mxu3 }
 0x3cb   : > { %v2583_v1 = vmax.f32 %v2551_v59, 0.0  ;;  %v2072_v49 = vadd.f32 %v2013_v27, %v1849_v56  ;;  %v4716_v27 = vld [vmem:[#allocation27_spill] sm:$0xff] }
 0x3cd   : > { %v2608_v30 = vpack.c.bf16 %v2583_v1, %v2582_v2  ;;  %v2294_v41 = vadd.f32 %v4295_v23, %v2072_v49 }
 0x3cf   : > { %3101 = vmatmul.msk.bf16.gmra.mxu2 %vm510_vm1, %v2608_v30  ;;  %v2516_v8 = vadd.f32 %v4297_v21, %v2294_v41  ;;  %v2469_v46 = vpop.f32.mrf.mxu1 }
 0x3d1   : > { %v2552_v26 = vadd.f32 %v4178_v13, %v2516_v8  ;;  %v2250_v59 = vpop.f32.mrf.mxu0  ;;  %v4718_v8 = vld [vmem:[#allocation69_spill] sm:$0xff] }
 0x3d2   : > { %v2015_v9 = vpop.f32.mrf.mxu3 }
 0x3d3   : > { %v2073_v33 = vadd.f32 %v2015_v9, %v1850_v25  ;;  %v2584_v45 = vmax.f32 %v2552_v26, 0.0 }
 0x3d5   : > { %v2295_v61 = vadd.f32 %v2237_v6, %v2073_v33  ;;  %v4719_v33 = vld [vmem:[#allocation30_spill] sm:$0xff] }
 0x3d7   : > { %v2517_v23 = vadd.f32 %v2459_v36, %v2295_v61  ;;  %v4358_v36 = vpop.f32.mrf.mxu2  ;;  %v2472_v1 = vpop.f32.mrf.mxu1  ;;  %v1411_v61 = vadd.f32 %v4719_v33, %v4718_v8 }
 0x3d9   : > { %v2553_v51 = vadd.f32 %v4178_v13, %v2517_v23  ;;  %v2252_v35 = vpop.f32.mrf.mxu0 }
 0x3da   : > { %v2018_v20 = vpop.f32.mrf.mxu3 }
 0x3db   : > { %v2585_v21 = vmax.f32 %v2553_v51, 0.0  ;;  %v2074_v37 = vadd.f32 %v2018_v20, %v1851_v34  ;;  %v3131_v20 = vld [vmem:[%s3231_s8] sm:$0xff] }
 0x3dd   : > { %v2609_v6 = vpack.c.bf16 %v2585_v21, %v2584_v45  ;;  %v2296_v4 = vadd.f32 %v2240_v42, %v2074_v37  ;;  %v4715_v42 = vld [vmem:[#allocation67_spill] sm:$0xff]  ;;  %v4720_v21 = vld [vmem:[#allocation57_spill] sm:$0xff] }
 0x3de   : > { %v1410_v2 = vadd.f32 %v4716_v27, %v4715_v42  ;;  %v1633_v37 = vadd.f32 %v4720_v21, %v1411_v61  ;;  %v4723_v42 = vld [vmem:[#allocation58_spill] sm:$0xff]  ;;  %v4726_v61 = vld [vmem:[#allocation59_spill] sm:$0xff] }
 0x3df   : > { %3102 = vmatmul.msk.bf16.gmra.mxu2 %vm510_vm1, %v2609_v6  ;;  %v2518_v18 = vadd.f32 %v2462_v50, %v2296_v4  ;;  %v4369_v30 = vpop.f32.mrf.mxu2  ;;  %v2474_v15 = vpop.f32.mrf.mxu1  ;;  %v4722_v4 = vld [vmem:[#allocation33_spill] sm:$0xff] }
 0x3e0   : > { %v1632_v25 = vadd.f32 %v4717_v48, %v1410_v2  ;;  %v1412_v14 = vadd.f32 %v4722_v4, %v4721_v60  ;;  %v1855_v5 = vadd.f32 %v4221_v54, %v1633_v37  ;;  %v4724_v54 = vld [vmem:[#allocation72_spill] sm:$0xff] }
 0x3e1   : > { %v2554_v58 = vadd.f32 %v4178_v13, %v2518_v18  ;;  %v4729_v4 = vld [vmem:[#allocation60_spill] sm:$0xff] }
 0x3e2   : > { %v2020_v38 = vpop.f32.mrf.mxu3  ;;  %v1854_v29 = vadd.f32 %v4205_v43, %v1632_v25  ;;  %v1634_v27 = vadd.f32 %v4723_v42, %v1412_v14 }
 0x3e3   : > { %v2075_v19 = vadd.f32 %v2020_v38, %v1852_v12  ;;  %v2586_v50 = vmax.f32 %v2554_v58, 0.0  ;;  %v2255_v38 = vpop.f32.mrf.mxu0 }
 0x3e5   : > { %v2297_v17 = vadd.f32 %v2242_v39, %v2075_v19 }
 0x3e7   : > { %v2519_v56 = vadd.f32 %v2464_v22, %v2297_v17  ;;  %v4376_v22 = vld [vmem:[%s4592_s6] ss:$0 sm:$0xff] }
 0x3e9   : > { %v2555_v49 = vadd.f32 %v4178_v13, %v2519_v56 }
 0x3ea   : > { %v2023_v63 = vpop.f32.mrf.mxu3 }
 0x3eb   : > { %v2587_v41 = vmax.f32 %v2555_v49, 0.0  ;;  %v2076_v39 = vadd.f32 %v2023_v63, %v1853_v16  ;;  %v4725_v16 = vld [vmem:[#allocation37_spill] sm:$0xff] }
 0x3ec   : > { %v1413_v63 = vadd.f32 %v4725_v16, %v4724_v54 }
 0x3ed   : > { %v2610_v55 = vpack.c.bf16 %v2587_v41, %v2586_v50  ;;  %v2298_v9 = vadd.f32 %v2245_v10, %v2076_v39  ;;  %v1856_v50 = vadd.f32 %v4236_v52, %v1634_v27  ;;  %v4727_v52 = vld [vmem:[#allocation73_spill] sm:$0xff] }
 0x3ef   : > { %3103 = vmatmul.msk.bf16.gmra.mxu2 %vm510_vm1, %v2610_v55  ;;  %v2520_v28 = vadd.f32 %v2467_v62, %v2298_v9  ;;  %v2257_v9 = vpop.f32.mrf.mxu0 }
 0x3f1   : > { %v2556_v43 = vadd.f32 %v4178_v13, %v2520_v28 }
 0x3f2   : > { %v2025_v26 = vpop.f32.mrf.mxu3  ;;  %v2683_v23 = vpop.f32.mrf.mxu2 }
 0x3f3   : > { %v2077_v51 = vadd.f32 %v2025_v26, %v1854_v29  ;;  %v2684_v10 = vadd.f32 %v4376_v22, %v2683_v23  ;;  %v2588_v18 = vmax.f32 %v2556_v43, 0.0  ;;  %v1635_v29 = vadd.f32 %v4726_v61, %v1413_v63 }
 0x3f5   : > { %v2299_v34 = vadd.f32 %v2247_v7, %v2077_v51  ;;  %v2763_v45 = vadd.f32 %v3131_v20, %v2684_v10  ;;  %v4728_v10 = vld [vmem:[#allocation40_spill] sm:$0xff]  ;;  %v1857_v20 = vadd.f32 %v4252_v57, %v1635_v29  ;;  %v4730_v57 = vld [vmem:[#allocation74_spill] sm:$0xff] }
 0x3f7   : > { %v2521_v6 = vadd.f32 %v2469_v46, %v2299_v34  ;;  %v2795_v62 = vmax.f32 %v2763_v45, 0.0  ;;  %v2477_v46 = vpop.f32.mrf.mxu1  ;;  %v1414_v34 = vadd.f32 %v4728_v10, %v4727_v52 }
 0x3f9   : > { %v2557_v7 = vadd.f32 %v4178_v13, %v2521_v6  ;;  %2827 = vst.msk [vmem:[%s4389_s18] sm:$0xff] %vm340_vm0, %v2795_v62  ;;  %v3134_v62 = vld [vmem:[%s3231_s8 + $0x18] sm:$0xff]  ;;  %v1636_v14 = vadd.f32 %v4729_v4, %v1414_v34  ;;  %v3137_v4 = vld [vmem:[%s3231_s8 + $0x30] sm:$0xff] }
 0x3fa   : > { %v2028_v11 = vpop.f32.mrf.mxu3  ;;  %v2685_v12 = vpop.f32.mrf.mxu2 }
 0x3fb   : > { %v2589_v19 = vmax.f32 %v2557_v7, 0.0  ;;  %v2078_v17 = vadd.f32 %v2028_v11, %v1855_v5  ;;  %v2686_v40 = vadd.f32 %v4376_v22, %v2685_v12  ;;  %v2260_v7 = vpop.f32.mrf.mxu0  ;;  %v4731_v12 = vld [vmem:[#allocation43_spill] sm:$0xff] }
 0x3fd   : > { %v2764_v58 = vadd.f32 %v3132_v32, %v2686_v40  ;;  %v2611_v56 = vpack.c.bf16 %v2589_v19, %v2588_v18  ;;  %v2300_v2 = vadd.f32 %v2250_v59, %v2078_v17  ;;  %v3133_v59 = vld [vmem:[%s3231_s8 + $0x10] sm:$0xff]  ;;  %v1415_v18 = vadd.f32 %v4731_v12, %v4730_v57 }
 0x3fe   : > { %v1858_v17 = vadd.f32 %v4271_v31, %v1636_v14  ;;  %v4734_v31 = vld [vmem:[#allocation46_spill] sm:$0xff] }
 0x3ff   : > { %v2796_v49 = vmax.f32 %v2764_v58, 0.0  ;;  %3104 = vmatmul.msk.bf16.gmra.mxu2 %vm510_vm1, %v2611_v56  ;;  %v2522_v55 = vadd.f32 %v2472_v1, %v2300_v2  ;;  %v2479_v26 = vpop.f32.mrf.mxu1 }
 0x401   : > { %2828 = vst.msk [vmem:[%s4389_s18 + $0x8] sm:$0xff] %vm340_vm0, %v2796_v49  ;;  %v2558_v23 = vadd.f32 %v4178_v13, %v2522_v55  ;;  %v4732_v49 = vld [vmem:[#allocation61_spill] sm:$0xff] }
 0x402   : > { %v2030_v41 = vpop.f32.mrf.mxu3  ;;  %v2688_v39 = vpop.f32.mrf.mxu2  ;;  %v1637_v54 = vadd.f32 %v4732_v49, %v1415_v18  ;;  %v4740_v18 = vld [vmem:[#allocation50_spill] sm:$0xff]  ;;  %v3138_v49 = vld [vmem:[%s3231_s8 + $0x38] sm:$0xff] }
 0x403   : > { %v2079_v48 = vadd.f32 %v2030_v41, %v1856_v50  ;;  %v2689_v25 = vadd.f32 %v4376_v22, %v2688_v39  ;;  %v2590_v21 = vmax.f32 %v2558_v23, 0.0  ;;  %v2262_v41 = vpop.f32.mrf.mxu0  ;;  %v4733_v39 = vld [vmem:[#allocation75_spill] sm:$0xff] }
 0x404   : > { %v1416_v55 = vadd.f32 %v4734_v31, %v4733_v39 }
 0x405   : > { %v2301_v8 = vadd.f32 %v2252_v35, %v2079_v48  ;;  %v2765_v33 = vadd.f32 %v3133_v59, %v2689_v25 }
 0x407   : > { %v2523_v28 = vadd.f32 %v2474_v15, %v2301_v8  ;;  %v2797_v51 = vmax.f32 %v2765_v33, 0.0  ;;  %v2482_v19 = vpop.f32.mrf.mxu1 }
 0x409   : > { %v2559_v1 = vadd.f32 %v4178_v13, %v2523_v28  ;;  %2829 = vst.msk [vmem:[%s4389_s18 + $0x10] sm:$0xff] %vm340_vm0, %v2797_v51  ;;  %v4735_v51 = vld [vmem:[#allocation62_spill] sm:$0xff] }
 0x40a   : > { %v2033_v35 = vpop.f32.mrf.mxu3  ;;  %v2690_v45 = vpop.f32.mrf.mxu2  ;;  %v1638_v52 = vadd.f32 %v4735_v51, %v1416_v55  ;;  %v4743_v55 = vld [vmem:[#allocation51_spill] sm:$0xff] }
 0x40b   : > { %v2591_v37 = vmax.f32 %v2559_v1, 0.0  ;;  %v2080_v43 = vadd.f32 %v2033_v35, %v1857_v20  ;;  %v2691_v6 = vadd.f32 %v4376_v22, %v2690_v45  ;;  %v4737_v1 = vld [vmem:[#allocation49_spill] sm:$0xff] }
 0x40c   : > { %v1860_v35 = vadd.f32 %v4300_v44, %v1638_v52  ;;  %v4739_v44 = vld [vmem:[#allocation77_spill] sm:$0xff] }
 0x40d   : > { %v2766_v15 = vadd.f32 %v3134_v62, %v2691_v6  ;;  %v2612_v60 = vpack.c.bf16 %v2591_v37, %v2590_v21  ;;  %v2302_v5 = vadd.f32 %v2255_v38, %v2080_v43  ;;  %v3135_v38 = vld [vmem:[%s3231_s8 + $0x20] sm:$0xff]  ;;  %v2265_v37 = vpop.f32.mrf.mxu0 }
 0x40f   : > { %v2798_v11 = vmax.f32 %v2766_v15, 0.0  ;;  %3105 = vmatmul.msk.bf16.gmra.mxu2 %vm510_vm1, %v2612_v60  ;;  %v2524_v58 = vadd.f32 %v2477_v46, %v2302_v5  ;;  %v1859_v46 = vadd.f32 %v4284_v3, %v1637_v54  ;;  %v2484_v8 = vpop.f32.mrf.mxu1  ;;  %v4736_v3 = vld [vmem:[#allocation76_spill] sm:$0xff] }
 0x410   : > { %v1417_v20 = vadd.f32 %v4737_v1, %v4736_v3  ;;  %v4745_v3 = vld [vmem:[#allocation79_spill] sm:$0xff] }
 0x411   : > { %2830 = vst.msk [vmem:[%s4389_s18 + $0x18] sm:$0xff] %vm340_vm0, %v2798_v11  ;;  %v2560_v16 = vadd.f32 %v4178_v13, %v2524_v58 }
 0x412   : > { %v2035_v40 = vpop.f32.mrf.mxu3  ;;  %v2693_v32 = vpop.f32.mrf.mxu2 }
 0x413   : > { %v2081_v56 = vadd.f32 %v2035_v40, %v1858_v17  ;;  %v2694_v42 = vadd.f32 %v4376_v22, %v2693_v32  ;;  %v2592_v59 = vmax.f32 %v2560_v16, 0.0  ;;  %v1418_v17 = vadd.f32 %v4740_v18, %v4739_v44  ;;  %v4749_v44 = vld [vmem:[#allocation53_spill] sm:$0xff] }
 0x415   : > { %v2303_v27 = vadd.f32 %v2257_v9, %v2081_v56  ;;  %v2767_v2 = vadd.f32 %v3135_v38, %v2694_v42 }
 0x417   : > { %v2525_v63 = vadd.f32 %v2479_v26, %v2303_v27  ;;  %v2799_v50 = vmax.f32 %v2767_v2, 0.0  ;;  %v3136_v26 = vld [vmem:[%s3231_s8 + $0x28] sm:$0xff]  ;;  %v2487_v15 = vpop.f32.mrf.mxu1  ;;  %v2267_v2 = vpop.f32.mrf.mxu0 }
 0x419   : > { %v2561_v48 = vadd.f32 %v4178_v13, %v2525_v63  ;;  %2831 = vst.msk [vmem:[%s4389_s18 + $0x20] sm:$0xff] %vm340_vm0, %v2799_v50  ;;  %v4741_v63 = vld [vmem:[#allocation64_spill] sm:$0xff] }
 0x41a   : > { %v2038_v25 = vpop.f32.mrf.mxu3  ;;  %v2695_v9 = vpop.f32.mrf.mxu2  ;;  %v1640_v50 = vadd.f32 %v4741_v63, %v1418_v17 }
 0x41b   : > { %v2593_v33 = vmax.f32 %v2561_v48, 0.0  ;;  %v2082_v61 = vadd.f32 %v2038_v25, %v1859_v46  ;;  %v2696_v29 = vadd.f32 %v4376_v22, %v2695_v9 }
 0x41c   : > { %v1862_v46 = vadd.f32 %v4327_v0, %v1640_v50  ;;  %v4746_v0 = vld [vmem:[#allocation52_spill] sm:$0xff] }
 0x41d   : > { %v2768_v23 = vadd.f32 %v3136_v26, %v2696_v29  ;;  %v2613_v28 = vpack.c.bf16 %v2593_v33, %v2592_v59  ;;  %v2304_v10 = vadd.f32 %v2260_v7, %v2082_v61  ;;  %v4738_v7 = vld [vmem:[#allocation63_spill] sm:$0xff]  ;;  %v3139_v29 = vld [vmem:[%s3231_s8 + $0x40] sm:$0xff]  ;;  %v1420_v1 = vadd.f32 %v4746_v0, %v4745_v3 }
 0x41e   : > { %v1639_v5 = vadd.f32 %v4738_v7, %v1417_v20  ;;  %v4747_v7 = vld [vmem:[#allocation66_spill] sm:$0xff] }
 0x41f   : > { %v2800_v34 = vmax.f32 %v2768_v23, 0.0  ;;  %3106 = vmatmul.msk.bf16.gmra.mxu2 %vm510_vm1, %v2613_v28  ;;  %v2526_v43 = vadd.f32 %v2482_v19, %v2304_v10  ;;  %v4744_v23 = vld [vmem:[#allocation65_spill] sm:$0xff]  ;;  %v2270_v51 = vpop.f32.mrf.mxu0 }
 0x420   : > { %v1861_v19 = vadd.f32 %v4315_v47, %v1639_v5  ;;  %v4742_v47 = vld [vmem:[#allocation78_spill] sm:$0xff]  ;;  %v1642_v5 = vadd.f32 %v4747_v7, %v1420_v1 }
 0x421   : > { %2832 = vst.msk [vmem:[%s4389_s18 + $0x28] sm:$0xff] %vm340_vm0, %v2800_v34  ;;  %v2562_v11 = vadd.f32 %v4178_v13, %v2526_v43  ;;  %v1419_v48 = vadd.f32 %v4743_v55, %v4742_v47  ;;  %v3144_v7 = vld [vmem:[%s3231_s8 + $0x68] sm:$0xff] }
 0x422   : > { %v2040_v45 = vpop.f32.mrf.mxu3  ;;  %v2698_v21 = vpop.f32.mrf.mxu2  ;;  %v1864_v17 = vadd.f32 %v4349_v53, %v1642_v5  ;;  %v4752_v53 = vld [vmem:[#allocation54_spill] sm:$0xff] }
 0x423   : > { %v2083_v6 = vadd.f32 %v2040_v45, %v1860_v35  ;;  %v2699_v62 = vadd.f32 %v4376_v22, %v2698_v21  ;;  %v2594_v56 = vmax.f32 %v2562_v11, 0.0  ;;  %v1641_v28 = vadd.f32 %v4744_v23, %v1419_v48  ;;  %v4753_v23 = vld [vmem:[#allocation70_spill] sm:$0xff] }
 0x425   : > { %v2305_v60 = vadd.f32 %v2262_v41, %v2083_v6  ;;  %v2769_v14 = vadd.f32 %v3137_v4, %v2699_v62  ;;  %v2489_v41 = vpop.f32.mrf.mxu1  ;;  %v1863_v45 = vadd.f32 %v4339_v24, %v1641_v28  ;;  %v4748_v24 = vld [vmem:[#allocation80_spill] sm:$0xff] }
 0x426   : > { %v1421_v18 = vadd.f32 %v4749_v44, %v4748_v24  ;;  %v3145_v24 = vld [vmem:[%s3231_s8 + $0x70] sm:$0xff] }
 0x427   : > { %v2527_v57 = vadd.f32 %v2484_v8, %v2305_v60  ;;  %v2801_v12 = vmax.f32 %v2769_v14, 0.0  ;;  %v3140_v60 = vld [vmem:[%s3231_s8 + $0x48] sm:$0xff] }
 0x429   : > { %v2563_v40 = vadd.f32 %v4178_v13, %v2527_v57  ;;  %2833 = vst.msk [vmem:[%s4389_s18 + $0x30] sm:$0xff] %vm340_vm0, %v2801_v12  ;;  %v2272_v12 = vpop.f32.mrf.mxu0 }
 0x42a   : > { %v2043_v32 = vpop.f32.mrf.mxu3  ;;  %v2700_v58 = vpop.f32.mrf.mxu2 }
 0x42b   : > { %v2595_v42 = vmax.f32 %v2563_v40, 0.0  ;;  %v2084_v27 = vadd.f32 %v2043_v32, %v1861_v19  ;;  %v2701_v38 = vadd.f32 %v4376_v22, %v2700_v58 }
 0x42d   : > { %v2770_v54 = vadd.f32 %v3138_v49, %v2701_v38  ;;  %v2614_v16 = vpack.c.bf16 %v2595_v42, %v2594_v56  ;;  %v2306_v39 = vadd.f32 %v2265_v37, %v2084_v27  ;;  %v2492_v20 = vpop.f32.mrf.mxu1  ;;  %v3141_v38 = vld [vmem:[%s3231_s8 + $0x50] sm:$0xff]  ;;  %v4750_v49 = vld [vmem:[#allocation68_spill] sm:$0xff] }
 0x42f   : > { %v2802_v31 = vmax.f32 %v2770_v54, 0.0  ;;  %3107 = vmatmul.msk.bf16.gmra.mxu2 %vm510_vm1, %v2614_v16  ;;  %v2528_v8 = vadd.f32 %v2487_v15, %v2306_v39  ;;  %v1643_v54 = vadd.f32 %v4750_v49, %v1421_v18 }
 0x431   : > { %2834 = vst.msk [vmem:[%s4389_s18 + $0x38] sm:$0xff] %vm340_vm0, %v2802_v31  ;;  %v2564_v52 = vadd.f32 %v4178_v13, %v2528_v8  ;;  %v2275_v47 = vpop.f32.mrf.mxu0  ;;  %v1865_v55 = vadd.f32 %v4358_v36, %v1643_v54 }
 0x432   : > { %v2045_v25 = vpop.f32.mrf.mxu3  ;;  %v2703_v9 = vpop.f32.mrf.mxu2 }
 0x433   : > { %v2085_v59 = vadd.f32 %v2045_v25, %v1862_v46  ;;  %v2704_v33 = vadd.f32 %v4376_v22, %v2703_v9  ;;  %v2596_v43 = vmax.f32 %v2564_v52, 0.0 }
 0x435   : > { %v2307_v61 = vadd.f32 %v2267_v2, %v2085_v59  ;;  %v2771_v26 = vadd.f32 %v3139_v29, %v2704_v33  ;;  %v2494_v42 = vpop.f32.mrf.mxu1 }
 0x437   : > { %v2529_v10 = vadd.f32 %v2489_v41, %v2307_v61  ;;  %v2803_v34 = vmax.f32 %v2771_v26, 0.0  ;;  %v4751_v41 = vld [vmem:[#allocation3_spill] sm:$0xff]  ;;  %v3142_v61 = vld [vmem:[%s3231_s8 + $0x58] sm:$0xff] }
 0x438   : > { %v1422_v39 = vadd.f32 %v4752_v53, %v4751_v41 }
 0x439   : > { %v2565_v35 = vadd.f32 %v4178_v13, %v2529_v10  ;;  %2835 = vst.msk [vmem:[%s4389_s18 + $0x40] sm:$0xff] %vm340_vm0, %v2803_v34 }
 0x43a   : > { %v2048_v21 = vpop.f32.mrf.mxu3  ;;  %v2705_v37 = vpop.f32.mrf.mxu2  ;;  %v1644_v28 = vadd.f32 %v4753_v23, %v1422_v39  ;;  %v3149_v39 = vld [vmem:[%s3231_s8 + $0x90] sm:$0xff] }
 0x43b   : > { %v2597_v6 = vmax.f32 %v2565_v35, 0.0  ;;  %v2086_v62 = vadd.f32 %v2048_v21, %v1863_v45  ;;  %v2706_v15 = vadd.f32 %v4376_v22, %v2705_v37  ;;  %v3143_v45 = vld [vmem:[%s3231_s8 + $0x60] sm:$0xff] }
 0x43c   : > { %v1866_v36 = vadd.f32 %v4369_v30, %v1644_v28  ;;  %v3152_v28 = vld [vmem:[%s3231_s8 + $0xa8] sm:$0xff] }
 0x43d   : > { %v2772_v4 = vadd.f32 %v3140_v60, %v2706_v15  ;;  %v2615_v14 = vpack.c.bf16 %v2597_v6, %v2596_v43  ;;  %v2308_v11 = vadd.f32 %v2270_v51, %v2086_v62  ;;  %v2497_v33 = vpop.f32.mrf.mxu1 }
 0x43f   : > { %v2804_v57 = vmax.f32 %v2772_v4, 0.0  ;;  %3108 = vmatmul.msk.bf16.gmra.mxu2 %vm510_vm1, %v2615_v14  ;;  %v2530_v32 = vadd.f32 %v2492_v20, %v2308_v11  ;;  %v2277_v20 = vpop.f32.mrf.mxu0 }
 0x441   : > { %2836 = vst.msk [vmem:[%s4389_s18 + $0x48] sm:$0xff] %vm340_vm0, %v2804_v57  ;;  %v2566_v16 = vadd.f32 %v4178_v13, %v2530_v32 }
 0x442   : > { %v2050_v40 = vpop.f32.mrf.mxu3  ;;  %v2708_v19 = vpop.f32.mrf.mxu2 }
 0x443   : > { %v2087_v58 = vadd.f32 %v2050_v40, %v1864_v17  ;;  %v2709_v56 = vadd.f32 %v4376_v22, %v2708_v19  ;;  %v2598_v25 = vmax.f32 %v2566_v16, 0.0  ;;  %v3146_v19 = vld [vmem:[%s3231_s8 + $0x78] sm:$0xff]  ;;  %v3148_v16 = vld [vmem:[%s3231_s8 + $0x88] sm:$0xff] }
 0x445   : > { %v2309_v27 = vadd.f32 %v2272_v12, %v2087_v58  ;;  %v2773_v2 = vadd.f32 %v3141_v38, %v2709_v56  ;;  %v2499_v37 = vpop.f32.mrf.mxu1 }
 0x447   : > { %v2531_v63 = vadd.f32 %v2494_v42, %v2309_v27  ;;  %v2805_v50 = vmax.f32 %v2773_v2, 0.0  ;;  %v3147_v27 = vld [vmem:[%s3231_s8 + $0x80] sm:$0xff] }
 0x449   : > { %v2567_v31 = vadd.f32 %v4178_v13, %v2531_v63  ;;  %2837 = vst.msk [vmem:[%s4389_s18 + $0x50] sm:$0xff] %vm340_vm0, %v2805_v50 }
 0x44a   : > { %v2053_v48 = vpop.f32.mrf.mxu3  ;;  %v2710_v46 = vpop.f32.mrf.mxu2 }
 0x44b   : > { %v2599_v9 = vmax.f32 %v2567_v31, 0.0  ;;  %v2088_v8 = vadd.f32 %v2053_v48, %v1865_v55  ;;  %v2711_v59 = vadd.f32 %v4376_v22, %v2710_v46  ;;  %v3150_v46 = vld [vmem:[%s3231_s8 + $0x98] sm:$0xff] }
 0x44d   : > { %v2774_v29 = vadd.f32 %v3142_v61, %v2711_v59  ;;  %v2616_v26 = vpack.c.bf16 %v2599_v9, %v2598_v25  ;;  %v2310_v51 = vadd.f32 %v2275_v47, %v2088_v8 }
 0x44f   : > { %v2806_v52 = vmax.f32 %v2774_v29, 0.0  ;;  %3109 = vmatmul.msk.bf16.gmra.mxu2 %vm510_vm1, %v2616_v26  ;;  %v2532_v3 = vadd.f32 %v2497_v33, %v2310_v51  ;;  %v3151_v33 = vld [vmem:[%s3231_s8 + $0xa0] sm:$0xff] }
 0x451   : > { %2838 = vst.msk [vmem:[%s4389_s18 + $0x58] sm:$0xff] %vm340_vm0, %v2806_v52  ;;  %v2568_v43 = vadd.f32 %v4178_v13, %v2532_v3 }
 0x452   : > { %v2055_v10 = vpop.f32.mrf.mxu3  ;;  %v2713_v34 = vpop.f32.mrf.mxu2 }
 0x453   : > { %v2089_v0 = vadd.f32 %v2055_v10, %v1866_v36  ;;  %v2714_v1 = vadd.f32 %v4376_v22, %v2713_v34  ;;  %v2600_v60 = vmax.f32 %v2568_v43, 0.0  ;;  %v3153_v34 = vld [vmem:[%s3231_s8 + $0xb0] sm:$0xff] }
 0x455   : > { %v2311_v35 = vadd.f32 %v2277_v20, %v2089_v0  ;;  %v2775_v21 = vadd.f32 %v3143_v45, %v2714_v1 }
 0x457   : > { %v2533_v6 = vadd.f32 %v2499_v37, %v2311_v35  ;;  %v2807_v62 = vmax.f32 %v2775_v21, 0.0  ;;  %v3154_v35 = vld [vmem:[%s3231_s8 + $0xb8] sm:$0xff] }
 0x459   : > { %v2569_v30 = vadd.f32 %v4178_v13, %v2533_v6  ;;  %2839 = vst.msk [vmem:[%s4389_s18 + $0x60] sm:$0xff] %vm340_vm0, %v2807_v62  ;;  %v3155_v6 = vld [vmem:[%s3231_s8 + $0xc0] sm:$0xff] }
 0x45a   : > { %v2715_v15 = vpop.f32.mrf.mxu2 }
 0x45b   : > { %v2601_v4 = vmax.f32 %v2569_v30, 0.0  ;;  %v2716_v14 = vadd.f32 %v4376_v22, %v2715_v15 }
 0x45d   : > { %v2776_v5 = vadd.f32 %v3144_v7, %v2716_v14  ;;  %v2617_v11 = vpack.c.bf16 %v2601_v4, %v2600_v60  ;;  %v3156_v4 = vld [vmem:[%s3231_s8 + $0xc8] sm:$0xff] }
 0x45f   : > { %v2808_v57 = vmax.f32 %v2776_v5, 0.0  ;;  %3110 = vmatmul.msk.bf16.gmra.mxu2 %vm510_vm1, %v2617_v11 }
 0x461   : > { %2840 = vst.msk [vmem:[%s4389_s18 + $0x68] sm:$0xff] %vm340_vm0, %v2808_v57  ;;  %v3157_v57 = vld [vmem:[%s3231_s8 + $0xd0] sm:$0xff] }
 0x462   : > { %v2718_v13 = vpop.f32.mrf.mxu2 }
 0x463   : > { %v2719_v12 = vadd.f32 %v4376_v22, %v2718_v13 }
 0x465   : > { %v2777_v44 = vadd.f32 %v3145_v24, %v2719_v12 }
 0x467   : > { %v2809_v18 = vmax.f32 %v2777_v44, 0.0 }
 0x469   : > { %2841 = vst.msk [vmem:[%s4389_s18 + $0x70] sm:$0xff] %vm340_vm0, %v2809_v18  ;;  %v3158_v18 = vld [vmem:[%s3231_s8 + $0xd8] sm:$0xff] }
 0x46a   : > { %v2720_v17 = vpop.f32.mrf.mxu2 }
 0x46b   : > { %v2721_v40 = vadd.f32 %v4376_v22, %v2720_v17 }
 0x46d   : > { %v2778_v32 = vadd.f32 %v3146_v19, %v2721_v40 }
 0x46f   : > { %v2810_v58 = vmax.f32 %v2778_v32, 0.0 }
 0x471   : > { %2842 = vst.msk [vmem:[%s4389_s18 + $0x78] sm:$0xff] %vm340_vm0, %v2810_v58  ;;  %v3159_v58 = vld [vmem:[%s3231_s8 + $0xe0] sm:$0xff] }
 0x472   : > { %v2723_v56 = vpop.f32.mrf.mxu2 }
 0x473   : > { %v2724_v42 = vadd.f32 %v4376_v22, %v2723_v56 }
 0x475   : > { %v2779_v38 = vadd.f32 %v3147_v27, %v2724_v42 }
 0x477   : > { %v2811_v2 = vmax.f32 %v2779_v38, 0.0 }
 0x479   : > { %2843 = vst.msk [vmem:[%s4389_s18 + $0x80] sm:$0xff] %vm340_vm0, %v2811_v2  ;;  %v3160_v2 = vld [vmem:[%s3231_s8 + $0xe8] sm:$0xff] }
 0x47a   : > { %v2725_v49 = vpop.f32.mrf.mxu2 }
 0x47b   : > { %v2726_v54 = vadd.f32 %v4376_v22, %v2725_v49 }
 0x47d   : > { %v2780_v63 = vadd.f32 %v3148_v16, %v2726_v54 }
 0x47f   : > { %v2812_v50 = vmax.f32 %v2780_v63, 0.0 }
 0x481   : > { %2844 = vst.msk [vmem:[%s4389_s18 + $0x88] sm:$0xff] %vm340_vm0, %v2812_v50  ;;  %v3161_v50 = vld [vmem:[%s3231_s8 + $0xf0] sm:$0xff] }
 0x482   : > { %v2728_v41 = vpop.f32.mrf.mxu2 }
 0x483   : > { %v2729_v53 = vadd.f32 %v4376_v22, %v2728_v41 }
 0x485   : > { %v2781_v31 = vadd.f32 %v3149_v39, %v2729_v53 }
 0x487   : > { %v2813_v47 = vmax.f32 %v2781_v31, 0.0 }
 0x489   : > { %2845 = vst.msk [vmem:[%s4389_s18 + $0x90] sm:$0xff] %vm340_vm0, %v2813_v47  ;;  %v3162_v47 = vld [vmem:[%s3231_s8 + $0xf8] sm:$0xff] }
 0x48a   : > { %v2730_v55 = vpop.f32.mrf.mxu2 }
 0x48b   : > { %v2731_v48 = vadd.f32 %v4376_v22, %v2730_v55 }
 0x48d   : > { %v2782_v25 = vadd.f32 %v3150_v46, %v2731_v48 }
 0x48f   : > { %v2814_v9 = vmax.f32 %v2782_v25, 0.0 }
 0x491   : > { %2846 = vst.msk [vmem:[%s4389_s18 + $0x98] sm:$0xff] %vm340_vm0, %v2814_v9 }
 0x492   : > { %v2733_v8 = vpop.f32.mrf.mxu2 }
 0x493   : > { %v2734_v59 = vadd.f32 %v4376_v22, %v2733_v8 }
 0x495   : > { %v2783_v61 = vadd.f32 %v3151_v33, %v2734_v59 }
 0x497   : > { %v2815_v29 = vmax.f32 %v2783_v61, 0.0 }
 0x499   : > { %2847 = vst.msk [vmem:[%s4389_s18 + $0xa0] sm:$0xff] %vm340_vm0, %v2815_v29 }
 0x49a   : > { %v2735_v26 = vpop.f32.mrf.mxu2 }
 0x49b   : > { %v2736_v23 = vadd.f32 %v4376_v22, %v2735_v26 }
 0x49d   : > { %v2784_v51 = vadd.f32 %v3152_v28, %v2736_v23 }
 0x49f   : > { %v2816_v52 = vmax.f32 %v2784_v51, 0.0 }
 0x4a1   : > { %2848 = vst.msk [vmem:[%s4389_s18 + $0xa8] sm:$0xff] %vm340_vm0, %v2816_v52 }
 0x4a2   : > { %v2738_v36 = vpop.f32.mrf.mxu2 }
 0x4a3   : > { %v2739_v10 = vadd.f32 %v4376_v22, %v2738_v36 }
 0x4a5   : > { %v2785_v3 = vadd.f32 %v3153_v34, %v2739_v10 }
 0x4a7   : > { %v2817_v0 = vmax.f32 %v2785_v3, 0.0 }
 0x4a9   : > { %2849 = vst.msk [vmem:[%s4389_s18 + $0xb0] sm:$0xff] %vm340_vm0, %v2817_v0 }
 0x4aa   : > { %v2740_v1 = vpop.f32.mrf.mxu2 }
 0x4ab   : > { %v2741_v20 = vadd.f32 %v4376_v22, %v2740_v1 }
 0x4ad   : > { %v2786_v45 = vadd.f32 %v3154_v35, %v2741_v20 }
 0x4af   : > { %v2818_v21 = vmax.f32 %v2786_v45, 0.0 }
 0x4b1   : > { %2850 = vst.msk [vmem:[%s4389_s18 + $0xb8] sm:$0xff] %vm340_vm0, %v2818_v21 }
 0x4b2   : > { %v2743_v37 = vpop.f32.mrf.mxu2 }
 0x4b3   : > { %v2744_v43 = vadd.f32 %v4376_v22, %v2743_v37 }
 0x4b5   : > { %v2787_v62 = vadd.f32 %v3155_v6, %v2744_v43 }
 0x4b7   : > { %v2819_v30 = vmax.f32 %v2787_v62, 0.0 }
 0x4b9   : > { %2851 = vst.msk [vmem:[%s4389_s18 + $0xc0] sm:$0xff] %vm340_vm0, %v2819_v30 }
 0x4ba   : > { %v2745_v15 = vpop.f32.mrf.mxu2 }
 0x4bb   : > { %v2746_v60 = vadd.f32 %v4376_v22, %v2745_v15 }
 0x4bd   : > { %v2788_v14 = vadd.f32 %v3156_v4, %v2746_v60 }
 0x4bf   : > { %v2820_v7 = vmax.f32 %v2788_v14, 0.0 }
 0x4c1   : > { %2852 = vst.msk [vmem:[%s4389_s18 + $0xc8] sm:$0xff] %vm340_vm0, %v2820_v7 }
 0x4c2   : > { %v2748_v5 = vpop.f32.mrf.mxu2 }
 0x4c3   : > { %v2749_v11 = vadd.f32 %v4376_v22, %v2748_v5 }
 0x4c5   : > { %v2789_v13 = vadd.f32 %v3157_v57, %v2749_v11 }
 0x4c7   : > { %v2821_v12 = vmax.f32 %v2789_v13, 0.0 }
 0x4c9   : > { %2853 = vst.msk [vmem:[%s4389_s18 + $0xd0] sm:$0xff] %vm340_vm0, %v2821_v12 }
 0x4ca   : > { %v2750_v24 = vpop.f32.mrf.mxu2 }
 0x4cb   : > { %v2751_v44 = vadd.f32 %v4376_v22, %v2750_v24 }
 0x4cd   : > { %v2790_v17 = vadd.f32 %v3158_v18, %v2751_v44 }
 0x4cf   : > { %v2822_v40 = vmax.f32 %v2790_v17, 0.0 }
 0x4d1   : > { %2854 = vst.msk [vmem:[%s4389_s18 + $0xd8] sm:$0xff] %vm340_vm0, %v2822_v40 }
 0x4d2   : > { %v2753_v19 = vpop.f32.mrf.mxu2 }
 0x4d3   : > { %v2754_v32 = vadd.f32 %v4376_v22, %v2753_v19 }
 0x4d5   : > { %v2791_v56 = vadd.f32 %v3159_v58, %v2754_v32 }
 0x4d7   : > { %v2823_v42 = vmax.f32 %v2791_v56, 0.0 }
 0x4d9   : > { %2855 = vst.msk [vmem:[%s4389_s18 + $0xe0] sm:$0xff] %vm340_vm0, %v2823_v42 }
 0x4da   : > { %v2755_v27 = vpop.f32.mrf.mxu2 }
 0x4db   : > { %v2756_v38 = vadd.f32 %v4376_v22, %v2755_v27 }
 0x4dd   : > { %v2792_v49 = vadd.f32 %v3160_v2, %v2756_v38 }
 0x4df   : > { %v2824_v54 = vmax.f32 %v2792_v49, 0.0 }
 0x4e1   : > { %2856 = vst.msk [vmem:[%s4389_s18 + $0xe8] sm:$0xff] %vm340_vm0, %v2824_v54 }
 0x4e2   : > { %v2758_v16 = vpop.f32.mrf.mxu2 }
 0x4e3   : > { %v2759_v63 = vadd.f32 %v4376_v22, %v2758_v16 }
 0x4e5   : > { %v2793_v41 = vadd.f32 %v3161_v50, %v2759_v63 }
 0x4e7   : > { %v2825_v53 = vmax.f32 %v2793_v41, 0.0 }
 0x4e9   : > { %2857 = vst.msk [vmem:[%s4389_s18 + $0xf0] sm:$0xff] %vm340_vm0, %v2825_v53 }
 0x4ea   : > { %v2760_v39 = vpop.f32.mrf.mxu2 }
 0x4eb   : > { %v2761_v31 = vadd.f32 %v4376_v22, %v2760_v39 }
 0x4ed   : > { %v2794_v55 = vadd.f32 %v3162_v47, %v2761_v31 }
 0x4ef   : > { %v2826_v48 = vmax.f32 %v2794_v55, 0.0 }
 0x4f1   : > { %2858 = vst.msk [vmem:[%s4389_s18 + $0xf8] sm:$0xff] %vm340_vm0, %v2826_v48 }
 0x4f2 PF: > { %s17_s24 = sadd.s32 1, %s3169_s24  }
 0x4f3   : > { %p14_p4 = scmp.ge.s32.totalorder %s17_s24, 4  }
 0x4f5   :  { %16 = sbr.rel (!%p14_p4) target bundleno = 1 (0x1), region = 88 }

</bundles_post_ra>
